<compile_context>
chip_gen: v7x
topology: tpu7x:2x2x1
jax: 0.10.0
libtpu: 0.0.40
codegen_flags: <defaults>
</compile_context>

<pallas_src>
import jax
import jax.numpy as jnp
import numpy as np
from jax import lax
from jax.experimental import pallas as pl
from jax.experimental.pallas import tpu as pltpu


def _spec(shape):
    # full-array block, single grid step
    return pl.BlockSpec(shape, lambda i: (0,) * len(shape))


# --------------------------- fused forward kernel --------------------------- #
def _fused_kernel(x_ref, wi_ref, bi_ref, whT_ref, bh_ref,
                  a_ref, w1_ref, b1_ref, w2_ref, b2_ref,
                  pm_ref, wfc_ref, bfc_ref,
                  o_ref, gi_scr):
    """x_ref: [T, N, 1]; o_ref: [G, C].  Everything else resident in VMEM."""
    T, N, _ = x_ref.shape
    H = whT_ref.shape[0]

    # ----- GRU (LeadRNN), PyTorch cell semantics -----
    # Hoist the input-gate computation (no recurrence) out of the serial loop:
    #   gi[:, :, 0:H]   = x*w_ir + (b_ir + b_hr)
    #   gi[:, :, H:2H]  = x*w_iz + (b_iz + b_hz)
    #   gi[:, :, 2H:3H] = x*w_in +  b_in
    gi_scr[...] = x_ref[...] * wi_ref[...] + bi_ref[...]        # [T, N, 3H]

    whT = whT_ref[...]                                          # [H, 3H]
    bh = bh_ref[...]                                            # [1, 3H] (0,0,b_hn)

    def step(t, h):
        gi = gi_scr[t]                                          # [N, 3H]
        gh = jnp.dot(h, whT, preferred_element_type=jnp.float32) + bh
        r = jax.nn.sigmoid(gi[:, :H] + gh[:, :H])
        z = jax.nn.sigmoid(gi[:, H:2 * H] + gh[:, H:2 * H])
        n = jnp.tanh(gi[:, 2 * H:] + r * gh[:, 2 * H:])
        return (1.0 - z) * n + z * h

    h = lax.fori_loop(0, T, step, jnp.zeros((N, H), jnp.float32), unroll=True)

    # ----- GCN1 + ReLU:  relu(A_hat @ (h @ W1) + b1) -----
    a_hat = a_ref[...]
    x1 = jnp.maximum(
        jnp.dot(a_hat,
                jnp.dot(h, w1_ref[...], preferred_element_type=jnp.float32),
                preferred_element_type=jnp.float32) + b1_ref[...], 0.0)

    # ----- GCN2 + ReLU -----
    x2 = jnp.maximum(
        jnp.dot(a_hat,
                jnp.dot(x1, w2_ref[...], preferred_element_type=jnp.float32),
                preferred_element_type=jnp.float32) + b2_ref[...], 0.0)

    # ----- global_mean_pool + Linear -----
    pooled = jnp.dot(pm_ref[...], x2, preferred_element_type=jnp.float32)   # [G, F]
    o_ref[...] = jnp.dot(pooled, wfc_ref[...],
                         preferred_element_type=jnp.float32) + bfc_ref[...]


@jax.jit
def ecg_rgnn_forward(x_raw, a_hat, pool_mat, p):
    N, T = x_raw.shape
    H = p["whT_cat"].shape[0]
    G = pool_mat.shape[0]
    C = p["Wfc"].shape[1]
    x_tn1 = jnp.transpose(x_raw)[:, :, None]                    # [T, N, 1]
    args = [x_tn1, p["wi_cat"], p["bi_cat"], p["whT_cat"], p["bh_cat"],
            a_hat, p["W1"], p["b1"], p["W2"], p["b2"],
            pool_mat, p["Wfc"], p["bfc"]]
    return pl.pallas_call(
        _fused_kernel,
        out_shape=jax.ShapeDtypeStruct((G, C), jnp.float32),
        grid=(1,),
        in_specs=[_spec(a.shape) for a in args],
        out_specs=_spec((G, C)),
        scratch_shapes=[pltpu.VMEM((T, N, 3 * H), jnp.float32)],
        compiler_params=pltpu.CompilerParams(dimension_semantics=("arbitrary",)),
    )(*args)


# ------------------------------ glue / params ------------------------------ #
def init_params(key, rnn_dim, gnn_dim, num_classes):
    H = rnn_dim
    ks = jax.random.split(key, 8)
    s = 1.0 / np.sqrt(H)
    wih = jax.random.uniform(ks[0], (3 * H, 1), minval=-s, maxval=s, dtype=jnp.float32)
    whh = jax.random.uniform(ks[1], (3 * H, H), minval=-s, maxval=s, dtype=jnp.float32)
    bih = jax.random.uniform(ks[2], (3 * H,), minval=-s, maxval=s, dtype=jnp.float32)
    bhh = jax.random.uniform(ks[3], (3 * H,), minval=-s, maxval=s, dtype=jnp.float32)

    p = {}
    # raw per-gate params (PyTorch r/z/n chunk order) -- used by the pure-JAX reference
    wir, wiz, win = [wih[i * H:(i + 1) * H, 0].reshape(1, H) for i in range(3)]
    bir, biz, bin_ = [bih[i * H:(i + 1) * H].reshape(1, H) for i in range(3)]
    bhr, bhz, bhn = [bhh[i * H:(i + 1) * H].reshape(1, H) for i in range(3)]
    whr, whz, whn = [whh[i * H:(i + 1) * H] for i in range(3)]
    p.update(wir=wir, wiz=wiz, win=win, bir=bir, biz=biz, bin=bin_,
             bhr=bhr, bhz=bhz, bhn=bhn, whr=whr, whz=whz, whn=whn)

    # pre-fused / pre-transposed kernel params (built once here, not per forward)
    p["wi_cat"] = jnp.concatenate([wir, wiz, win], axis=1).reshape(1, 1, 3 * H)
    p["bi_cat"] = jnp.concatenate([bir + bhr, biz + bhz, bin_],
                                  axis=1).reshape(1, 1, 3 * H)
    p["whT_cat"] = jnp.concatenate([whr.T, whz.T, whn.T], axis=1)      # [H, 3H]
    p["bh_cat"] = jnp.concatenate([jnp.zeros((1, 2 * H), jnp.float32), bhn], axis=1)

    def glorot(k, fan_in, fan_out):
        lim = np.sqrt(6.0 / (fan_in + fan_out))
        return jax.random.uniform(k, (fan_in, fan_out), minval=-lim, maxval=lim,
                                  dtype=jnp.float32)

    p["W1"] = glorot(ks[4], rnn_dim, gnn_dim)
    p["b1"] = jnp.zeros((1, gnn_dim), jnp.float32)
    p["W2"] = glorot(ks[5], gnn_dim, gnn_dim)
    p["b2"] = jnp.zeros((1, gnn_dim), jnp.float32)
    sf = 1.0 / np.sqrt(gnn_dim)
    p["Wfc"] = jax.random.uniform(ks[6], (gnn_dim, num_classes), minval=-sf, maxval=sf,
                                  dtype=jnp.float32)
    p["bfc"] = jax.random.uniform(ks[7], (1, num_classes), minval=-sf, maxval=sf,
                                  dtype=jnp.float32)
    return p


def build_graph(num_graphs, leads_per_graph):
    """Fully-connected leads within each graph (no self-loops); PyG-style."""
    n = num_graphs * leads_per_graph
    src, dst = [], []
    for g in range(num_graphs):
        off = g * leads_per_graph
        for i in range(leads_per_graph):
            for j in range(leads_per_graph):
                if i != j:
                    src.append(off + i)
                    dst.append(off + j)
    edge_index = np.array([src, dst], dtype=np.int32)
    batch = np.repeat(np.arange(num_graphs, dtype=np.int32), leads_per_graph)
    return edge_index, batch, n


def gcn_normalize(edge_index, n):
    """A_hat = D^{-1/2} (A + I) D^{-1/2}  (GCNConv default normalization)."""
    a = np.zeros((n, n), dtype=np.float32)
    a[edge_index[1], edge_index[0]] = 1.0     # message j -> i
    a = a + np.eye(n, dtype=np.float32)       # add self loops
    deg = a.sum(axis=1)
    dinv = 1.0 / np.sqrt(deg)
    return jnp.asarray(dinv[:, None] * a * dinv[None, :])


def make_pool_matrix(batch, num_graphs):
    n = batch.shape[0]
    pm = np.zeros((num_graphs, n), dtype=np.float32)
    for g in range(num_graphs):
        idx = np.where(batch == g)[0]
        pm[g, idx] = 1.0 / len(idx)
    return jnp.asarray(pm)


# ----------------------------- pure-JAX reference --------------------------- #
def ref_forward(x_raw, a_hat, pool_mat, p):
    N, T = x_raw.shape
    H = p["whr"].shape[0]
    h = jnp.zeros((N, H), jnp.float32)
    for t in range(T):
        x_t = x_raw[:, t:t + 1]
        gh_r = h @ p["whr"].T + p["bhr"]
        gh_z = h @ p["whz"].T + p["bhz"]
        gh_n = h @ p["whn"].T + p["bhn"]
        r = jax.nn.sigmoid(x_t * p["wir"] + p["bir"] + gh_r)
        z = jax.nn.sigmoid(x_t * p["wiz"] + p["biz"] + gh_z)
        n = jnp.tanh(x_t * p["win"] + p["bin"] + r * gh_n)
        h = (1.0 - z) * n + z * h
    x1 = jnp.maximum(a_hat @ (h @ p["W1"]) + p["b1"], 0.0)
    x2 = jnp.maximum(a_hat @ (x1 @ p["W2"]) + p["b2"], 0.0)
    return pool_mat @ x2 @ p["Wfc"] + p["bfc"]


# ---------------------------------- main ----------------------------------- #
if __name__ == "__main__":
    rnn_output_dim = 32
    gnn_hidden_dim = 32
    num_classes = 4
    num_graphs = 2
    leads_per_graph = 12
    seq_len = 8

    edge_index, batch, n_nodes = build_graph(num_graphs, leads_per_graph)

    key = jax.random.PRNGKey(0)
    k_x, k_p = jax.random.split(key)
    x_raw = jax.random.normal(k_x, (n_nodes, seq_len), dtype=jnp.float32)  # data.x
    params = init_params(k_p, rnn_output_dim, gnn_hidden_dim, num_classes)

    a_hat = gcn_normalize(edge_index, n_nodes)           # glue: dense normalized adj
    pool_mat = make_pool_matrix(batch, num_graphs)       # glue: global_mean_pool matrix

    out = ecg_rgnn_forward(x_raw, a_hat, pool_mat, params)
    out = jax.block_until_ready(out)

    ref = ref_forward(x_raw, a_hat, pool_mat, params)
    assert out.shape == (num_graphs, num_classes)
    np.testing.assert_allclose(np.asarray(out), np.asarray(ref), rtol=2e-3, atol=2e-3)

    print("KERNEL_OK")
</pallas_src>

<mosaic_0001>
module attributes {stable_mosaic.version = 11 : i64} {
  func.func @_fused_kernel(%arg0: i32, %arg1: memref<8x24x1xf32, #tpu.memory_space<vmem>>, %arg2: memref<1x1x96xf32, #tpu.memory_space<vmem>>, %arg3: memref<1x1x96xf32, #tpu.memory_space<vmem>>, %arg4: memref<32x96xf32, #tpu.memory_space<vmem>>, %arg5: memref<1x96xf32, #tpu.memory_space<vmem>>, %arg6: memref<24x24xf32, #tpu.memory_space<vmem>>, %arg7: memref<32x32xf32, #tpu.memory_space<vmem>>, %arg8: memref<1x32xf32, #tpu.memory_space<vmem>>, %arg9: memref<32x32xf32, #tpu.memory_space<vmem>>, %arg10: memref<1x32xf32, #tpu.memory_space<vmem>>, %arg11: memref<2x24xf32, #tpu.memory_space<vmem>>, %arg12: memref<32x4xf32, #tpu.memory_space<vmem>>, %arg13: memref<1x4xf32, #tpu.memory_space<vmem>>, %arg14: memref<2x4xf32, #tpu.memory_space<vmem>>, %arg15: memref<8x24x96xf32, #tpu.memory_space<vmem>>) attributes {dimension_semantics = [#tpu.dimension_semantics<arbitrary>], iteration_bounds = array<i64: 1>, scalar_prefetch = 0 : i64, scratch_operands = 1 : i64, tpu.core_type = #tpu.core_type<tc>, window_params = [{pipeline_mode = #tpu.pipeline_mode<synchronous>, transform_indices = @transform_0, window_bounds = array<i64: 8, 24, 1>}, {pipeline_mode = #tpu.pipeline_mode<synchronous>, transform_indices = @transform_1, window_bounds = array<i64: 1, 1, 96>}, {pipeline_mode = #tpu.pipeline_mode<synchronous>, transform_indices = @transform_2, window_bounds = array<i64: 1, 1, 96>}, {pipeline_mode = #tpu.pipeline_mode<synchronous>, transform_indices = @transform_3, window_bounds = array<i64: 32, 96>}, {pipeline_mode = #tpu.pipeline_mode<synchronous>, transform_indices = @transform_4, window_bounds = array<i64: 1, 96>}, {pipeline_mode = #tpu.pipeline_mode<synchronous>, transform_indices = @transform_5, window_bounds = array<i64: 24, 24>}, {pipeline_mode = #tpu.pipeline_mode<synchronous>, transform_indices = @transform_6, window_bounds = array<i64: 32, 32>}, {pipeline_mode = #tpu.pipeline_mode<synchronous>, transform_indices = @transform_7, window_bounds = array<i64: 1, 32>}, {pipeline_mode = #tpu.pipeline_mode<synchronous>, transform_indices = @transform_8, window_bounds = array<i64: 32, 32>}, {pipeline_mode = #tpu.pipeline_mode<synchronous>, transform_indices = @transform_9, window_bounds = array<i64: 1, 32>}, {pipeline_mode = #tpu.pipeline_mode<synchronous>, transform_indices = @transform_10, window_bounds = array<i64: 2, 24>}, {pipeline_mode = #tpu.pipeline_mode<synchronous>, transform_indices = @transform_11, window_bounds = array<i64: 32, 4>}, {pipeline_mode = #tpu.pipeline_mode<synchronous>, transform_indices = @transform_12, window_bounds = array<i64: 1, 4>}, {pipeline_mode = #tpu.pipeline_mode<synchronous>, transform_indices = @transform_13, window_bounds = array<i64: 2, 4>}]} {
    %c0 = arith.constant 0 : index
    %c0_0 = arith.constant 0 : index
    %c0_1 = arith.constant 0 : index
    %0 = vector.load %arg1[%c0, %c0_0, %c0_1] : memref<8x24x1xf32, #tpu.memory_space<vmem>>, vector<8x24x1xf32>
    %c0_2 = arith.constant 0 : index
    %c0_3 = arith.constant 0 : index
    %c0_4 = arith.constant 0 : index
    %1 = vector.load %arg2[%c0_2, %c0_3, %c0_4] : memref<1x1x96xf32, #tpu.memory_space<vmem>>, vector<1x1x96xf32>
    %2 = vector.broadcast %0 : vector<8x24x1xf32> to vector<8x24x96xf32>
    %3 = vector.broadcast %1 : vector<1x1x96xf32> to vector<8x24x96xf32>
    %4 = arith.mulf %2, %3 : vector<8x24x96xf32>
    %c0_5 = arith.constant 0 : index
    %c0_6 = arith.constant 0 : index
    %c0_7 = arith.constant 0 : index
    %5 = vector.load %arg3[%c0_5, %c0_6, %c0_7] : memref<1x1x96xf32, #tpu.memory_space<vmem>>, vector<1x1x96xf32>
    %6 = vector.broadcast %5 : vector<1x1x96xf32> to vector<8x24x96xf32>
    %7 = arith.addf %4, %6 : vector<8x24x96xf32>
    %c0_8 = arith.constant 0 : index
    %c0_9 = arith.constant 0 : index
    %c0_10 = arith.constant 0 : index
    %8 = vector.load %arg15[%c0_8, %c0_9, %c0_10] : memref<8x24x96xf32, #tpu.memory_space<vmem>>, vector<8x24x96xf32>
    tpu.vector_store %arg15[%c0_8, %c0_9, %c0_10], %7 {strides = array<i32>} : memref<8x24x96xf32, #tpu.memory_space<vmem>>, vector<8x24x96xf32>,
    %c0_11 = arith.constant 0 : index
    %c0_12 = arith.constant 0 : index
    %9 = vector.load %arg4[%c0_11, %c0_12] : memref<32x96xf32, #tpu.memory_space<vmem>>, vector<32x96xf32>
    %c0_13 = arith.constant 0 : index
    %c0_14 = arith.constant 0 : index
    %10 = vector.load %arg5[%c0_13, %c0_14] : memref<1x96xf32, #tpu.memory_space<vmem>>, vector<1x96xf32>
    %cst = arith.constant 0.000000e+00 : f32
    %11 = vector.broadcast %cst : f32 to vector<24x32xf32>
    %c0_i32 = arith.constant 0 : i32
    %12 = arith.index_cast %c0_i32 : i32 to index
    %c0_15 = arith.constant 0 : index
    %c0_16 = arith.constant 0 : index
    %13 = vector.load %arg15[%12, %c0_15, %c0_16] : memref<8x24x96xf32, #tpu.memory_space<vmem>>, vector<1x24x96xf32>
    %14 = vector.shape_cast %13 : vector<1x24x96xf32> to vector<24x96xf32>
    %cst_17 = arith.constant dense<0.000000e+00> : vector<24x96xf32>
    %15 = tpu.matmul %11, %9, %cst_17 {dimension_numbers = #tpu.dot_dimension_numbers<[1], [0], [0], [1], [0, 0, 1, 1], [], []>} : vector<24x32xf32>, vector<32x96xf32>, vector<24x96xf32> -> vector<24x96xf32>
    %16 = vector.broadcast %10 : vector<1x96xf32> to vector<24x96xf32>
    %17 = arith.addf %15, %16 : vector<24x96xf32>
    %18 = vector.extract_strided_slice %14 {offsets = [0, 0], sizes = [24, 32], strides = [1, 1]} : vector<24x96xf32> to vector<24x32xf32>
    %19 = vector.extract_strided_slice %17 {offsets = [0, 0], sizes = [24, 32], strides = [1, 1]} : vector<24x96xf32> to vector<24x32xf32>
    %20 = arith.addf %18, %19 : vector<24x32xf32>
    %21 = arith.negf %20 : vector<24x32xf32>
    %22 = math.exp %21 : vector<24x32xf32>
    %cst_18 = arith.constant 1.000000e+00 : f32
    %23 = vector.broadcast %cst_18 : f32 to vector<24x32xf32>
    %24 = arith.addf %23, %22 : vector<24x32xf32>
    %25 = arith.divf %23, %24 : vector<24x32xf32>
    %26 = vector.extract_strided_slice %14 {offsets = [0, 32], sizes = [24, 32], strides = [1, 1]} : vector<24x96xf32> to vector<24x32xf32>
    %27 = vector.extract_strided_slice %17 {offsets = [0, 32], sizes = [24, 32], strides = [1, 1]} : vector<24x96xf32> to vector<24x32xf32>
    %28 = arith.addf %26, %27 : vector<24x32xf32>
    %29 = arith.negf %28 : vector<24x32xf32>
    %30 = math.exp %29 : vector<24x32xf32>
    %cst_19 = arith.constant 1.000000e+00 : f32
    %31 = vector.broadcast %cst_19 : f32 to vector<24x32xf32>
    %32 = arith.addf %31, %30 : vector<24x32xf32>
    %33 = arith.divf %31, %32 : vector<24x32xf32>
    %34 = vector.extract_strided_slice %14 {offsets = [0, 64], sizes = [24, 32], strides = [1, 1]} : vector<24x96xf32> to vector<24x32xf32>
    %35 = vector.extract_strided_slice %17 {offsets = [0, 64], sizes = [24, 32], strides = [1, 1]} : vector<24x96xf32> to vector<24x32xf32>
    %36 = arith.mulf %25, %35 : vector<24x32xf32>
    %37 = arith.addf %34, %36 : vector<24x32xf32>
    %38 = math.tanh %37 : vector<24x32xf32>
    %cst_20 = arith.constant 1.000000e+00 : f32
    %39 = vector.broadcast %cst_20 : f32 to vector<24x32xf32>
    %40 = arith.subf %39, %33 : vector<24x32xf32>
    %41 = arith.mulf %40, %38 : vector<24x32xf32>
    %42 = arith.mulf %33, %11 : vector<24x32xf32>
    %43 = arith.addf %41, %42 : vector<24x32xf32>
    %c1_i32 = arith.constant 1 : i32
    %44 = arith.index_cast %c1_i32 : i32 to index
    %c0_21 = arith.constant 0 : index
    %c0_22 = arith.constant 0 : index
    %45 = vector.load %arg15[%44, %c0_21, %c0_22] : memref<8x24x96xf32, #tpu.memory_space<vmem>>, vector<1x24x96xf32>
    %46 = vector.shape_cast %45 : vector<1x24x96xf32> to vector<24x96xf32>
    %cst_23 = arith.constant dense<0.000000e+00> : vector<24x96xf32>
    %47 = tpu.matmul %43, %9, %cst_23 {dimension_numbers = #tpu.dot_dimension_numbers<[1], [0], [0], [1], [0, 0, 1, 1], [], []>} : vector<24x32xf32>, vector<32x96xf32>, vector<24x96xf32> -> vector<24x96xf32>
    %48 = vector.broadcast %10 : vector<1x96xf32> to vector<24x96xf32>
    %49 = arith.addf %47, %48 : vector<24x96xf32>
    %50 = vector.extract_strided_slice %46 {offsets = [0, 0], sizes = [24, 32], strides = [1, 1]} : vector<24x96xf32> to vector<24x32xf32>
    %51 = vector.extract_strided_slice %49 {offsets = [0, 0], sizes = [24, 32], strides = [1, 1]} : vector<24x96xf32> to vector<24x32xf32>
    %52 = arith.addf %50, %51 : vector<24x32xf32>
    %53 = arith.negf %52 : vector<24x32xf32>
    %54 = math.exp %53 : vector<24x32xf32>
    %cst_24 = arith.constant 1.000000e+00 : f32
    %55 = vector.broadcast %cst_24 : f32 to vector<24x32xf32>
    %56 = arith.addf %55, %54 : vector<24x32xf32>
    %57 = arith.divf %55, %56 : vector<24x32xf32>
    %58 = vector.extract_strided_slice %46 {offsets = [0, 32], sizes = [24, 32], strides = [1, 1]} : vector<24x96xf32> to vector<24x32xf32>
    %59 = vector.extract_strided_slice %49 {offsets = [0, 32], sizes = [24, 32], strides = [1, 1]} : vector<24x96xf32> to vector<24x32xf32>
    %60 = arith.addf %58, %59 : vector<24x32xf32>
    %61 = arith.negf %60 : vector<24x32xf32>
    %62 = math.exp %61 : vector<24x32xf32>
    %cst_25 = arith.constant 1.000000e+00 : f32
    %63 = vector.broadcast %cst_25 : f32 to vector<24x32xf32>
    %64 = arith.addf %63, %62 : vector<24x32xf32>
    %65 = arith.divf %63, %64 : vector<24x32xf32>
    %66 = vector.extract_strided_slice %46 {offsets = [0, 64], sizes = [24, 32], strides = [1, 1]} : vector<24x96xf32> to vector<24x32xf32>
    %67 = vector.extract_strided_slice %49 {offsets = [0, 64], sizes = [24, 32], strides = [1, 1]} : vector<24x96xf32> to vector<24x32xf32>
    %68 = arith.mulf %57, %67 : vector<24x32xf32>
    %69 = arith.addf %66, %68 : vector<24x32xf32>
    %70 = math.tanh %69 : vector<24x32xf32>
    %cst_26 = arith.constant 1.000000e+00 : f32
    %71 = vector.broadcast %cst_26 : f32 to vector<24x32xf32>
    %72 = arith.subf %71, %65 : vector<24x32xf32>
    %73 = arith.mulf %72, %70 : vector<24x32xf32>
    %74 = arith.mulf %65, %43 : vector<24x32xf32>
    %75 = arith.addf %73, %74 : vector<24x32xf32>
    %c2_i32 = arith.constant 2 : i32
    %76 = arith.index_cast %c2_i32 : i32 to index
    %c0_27 = arith.constant 0 : index
    %c0_28 = arith.constant 0 : index
    %77 = vector.load %arg15[%76, %c0_27, %c0_28] : memref<8x24x96xf32, #tpu.memory_space<vmem>>, vector<1x24x96xf32>
    %78 = vector.shape_cast %77 : vector<1x24x96xf32> to vector<24x96xf32>
    %cst_29 = arith.constant dense<0.000000e+00> : vector<24x96xf32>
    %79 = tpu.matmul %75, %9, %cst_29 {dimension_numbers = #tpu.dot_dimension_numbers<[1], [0], [0], [1], [0, 0, 1, 1], [], []>} : vector<24x32xf32>, vector<32x96xf32>, vector<24x96xf32> -> vector<24x96xf32>
    %80 = vector.broadcast %10 : vector<1x96xf32> to vector<24x96xf32>
    %81 = arith.addf %79, %80 : vector<24x96xf32>
    %82 = vector.extract_strided_slice %78 {offsets = [0, 0], sizes = [24, 32], strides = [1, 1]} : vector<24x96xf32> to vector<24x32xf32>
    %83 = vector.extract_strided_slice %81 {offsets = [0, 0], sizes = [24, 32], strides = [1, 1]} : vector<24x96xf32> to vector<24x32xf32>
    %84 = arith.addf %82, %83 : vector<24x32xf32>
    %85 = arith.negf %84 : vector<24x32xf32>
    %86 = math.exp %85 : vector<24x32xf32>
    %cst_30 = arith.constant 1.000000e+00 : f32
    %87 = vector.broadcast %cst_30 : f32 to vector<24x32xf32>
    %88 = arith.addf %87, %86 : vector<24x32xf32>
    %89 = arith.divf %87, %88 : vector<24x32xf32>
    %90 = vector.extract_strided_slice %78 {offsets = [0, 32], sizes = [24, 32], strides = [1, 1]} : vector<24x96xf32> to vector<24x32xf32>
    %91 = vector.extract_strided_slice %81 {offsets = [0, 32], sizes = [24, 32], strides = [1, 1]} : vector<24x96xf32> to vector<24x32xf32>
    %92 = arith.addf %90, %91 : vector<24x32xf32>
    %93 = arith.negf %92 : vector<24x32xf32>
    %94 = math.exp %93 : vector<24x32xf32>
    %cst_31 = arith.constant 1.000000e+00 : f32
    %95 = vector.broadcast %cst_31 : f32 to vector<24x32xf32>
    %96 = arith.addf %95, %94 : vector<24x32xf32>
    %97 = arith.divf %95, %96 : vector<24x32xf32>
    %98 = vector.extract_strided_slice %78 {offsets = [0, 64], sizes = [24, 32], strides = [1, 1]} : vector<24x96xf32> to vector<24x32xf32>
    %99 = vector.extract_strided_slice %81 {offsets = [0, 64], sizes = [24, 32], strides = [1, 1]} : vector<24x96xf32> to vector<24x32xf32>
    %100 = arith.mulf %89, %99 : vector<24x32xf32>
    %101 = arith.addf %98, %100 : vector<24x32xf32>
    %102 = math.tanh %101 : vector<24x32xf32>
    %cst_32 = arith.constant 1.000000e+00 : f32
    %103 = vector.broadcast %cst_32 : f32 to vector<24x32xf32>
    %104 = arith.subf %103, %97 : vector<24x32xf32>
    %105 = arith.mulf %104, %102 : vector<24x32xf32>
    %106 = arith.mulf %97, %75 : vector<24x32xf32>
    %107 = arith.addf %105, %106 : vector<24x32xf32>
    %c3_i32 = arith.constant 3 : i32
    %108 = arith.index_cast %c3_i32 : i32 to index
    %c0_33 = arith.constant 0 : index
    %c0_34 = arith.constant 0 : index
    %109 = vector.load %arg15[%108, %c0_33, %c0_34] : memref<8x24x96xf32, #tpu.memory_space<vmem>>, vector<1x24x96xf32>
    %110 = vector.shape_cast %109 : vector<1x24x96xf32> to vector<24x96xf32>
    %cst_35 = arith.constant dense<0.000000e+00> : vector<24x96xf32>
    %111 = tpu.matmul %107, %9, %cst_35 {dimension_numbers = #tpu.dot_dimension_numbers<[1], [0], [0], [1], [0, 0, 1, 1], [], []>} : vector<24x32xf32>, vector<32x96xf32>, vector<24x96xf32> -> vector<24x96xf32>
    %112 = vector.broadcast %10 : vector<1x96xf32> to vector<24x96xf32>
    %113 = arith.addf %111, %112 : vector<24x96xf32>
    %114 = vector.extract_strided_slice %110 {offsets = [0, 0], sizes = [24, 32], strides = [1, 1]} : vector<24x96xf32> to vector<24x32xf32>
    %115 = vector.extract_strided_slice %113 {offsets = [0, 0], sizes = [24, 32], strides = [1, 1]} : vector<24x96xf32> to vector<24x32xf32>
    %116 = arith.addf %114, %115 : vector<24x32xf32>
    %117 = arith.negf %116 : vector<24x32xf32>
    %118 = math.exp %117 : vector<24x32xf32>
    %cst_36 = arith.constant 1.000000e+00 : f32
    %119 = vector.broadcast %cst_36 : f32 to vector<24x32xf32>
    %120 = arith.addf %119, %118 : vector<24x32xf32>
    %121 = arith.divf %119, %120 : vector<24x32xf32>
    %122 = vector.extract_strided_slice %110 {offsets = [0, 32], sizes = [24, 32], strides = [1, 1]} : vector<24x96xf32> to vector<24x32xf32>
    %123 = vector.extract_strided_slice %113 {offsets = [0, 32], sizes = [24, 32], strides = [1, 1]} : vector<24x96xf32> to vector<24x32xf32>
    %124 = arith.addf %122, %123 : vector<24x32xf32>
    %125 = arith.negf %124 : vector<24x32xf32>
    %126 = math.exp %125 : vector<24x32xf32>
    %cst_37 = arith.constant 1.000000e+00 : f32
    %127 = vector.broadcast %cst_37 : f32 to vector<24x32xf32>
    %128 = arith.addf %127, %126 : vector<24x32xf32>
    %129 = arith.divf %127, %128 : vector<24x32xf32>
    %130 = vector.extract_strided_slice %110 {offsets = [0, 64], sizes = [24, 32], strides = [1, 1]} : vector<24x96xf32> to vector<24x32xf32>
    %131 = vector.extract_strided_slice %113 {offsets = [0, 64], sizes = [24, 32], strides = [1, 1]} : vector<24x96xf32> to vector<24x32xf32>
    %132 = arith.mulf %121, %131 : vector<24x32xf32>
    %133 = arith.addf %130, %132 : vector<24x32xf32>
    %134 = math.tanh %133 : vector<24x32xf32>
    %cst_38 = arith.constant 1.000000e+00 : f32
    %135 = vector.broadcast %cst_38 : f32 to vector<24x32xf32>
    %136 = arith.subf %135, %129 : vector<24x32xf32>
    %137 = arith.mulf %136, %134 : vector<24x32xf32>
    %138 = arith.mulf %129, %107 : vector<24x32xf32>
    %139 = arith.addf %137, %138 : vector<24x32xf32>
    %c4_i32 = arith.constant 4 : i32
    %140 = arith.index_cast %c4_i32 : i32 to index
    %c0_39 = arith.constant 0 : index
    %c0_40 = arith.constant 0 : index
    %141 = vector.load %arg15[%140, %c0_39, %c0_40] : memref<8x24x96xf32, #tpu.memory_space<vmem>>, vector<1x24x96xf32>
    %142 = vector.shape_cast %141 : vector<1x24x96xf32> to vector<24x96xf32>
    %cst_41 = arith.constant dense<0.000000e+00> : vector<24x96xf32>
    %143 = tpu.matmul %139, %9, %cst_41 {dimension_numbers = #tpu.dot_dimension_numbers<[1], [0], [0], [1], [0, 0, 1, 1], [], []>} : vector<24x32xf32>, vector<32x96xf32>, vector<24x96xf32> -> vector<24x96xf32>
    %144 = vector.broadcast %10 : vector<1x96xf32> to vector<24x96xf32>
    %145 = arith.addf %143, %144 : vector<24x96xf32>
    %146 = vector.extract_strided_slice %142 {offsets = [0, 0], sizes = [24, 32], strides = [1, 1]} : vector<24x96xf32> to vector<24x32xf32>
    %147 = vector.extract_strided_slice %145 {offsets = [0, 0], sizes = [24, 32], strides = [1, 1]} : vector<24x96xf32> to vector<24x32xf32>
    %148 = arith.addf %146, %147 : vector<24x32xf32>
    %149 = arith.negf %148 : vector<24x32xf32>
    %150 = math.exp %149 : vector<24x32xf32>
    %cst_42 = arith.constant 1.000000e+00 : f32
    %151 = vector.broadcast %cst_42 : f32 to vector<24x32xf32>
    %152 = arith.addf %151, %150 : vector<24x32xf32>
    %153 = arith.divf %151, %152 : vector<24x32xf32>
    %154 = vector.extract_strided_slice %142 {offsets = [0, 32], sizes = [24, 32], strides = [1, 1]} : vector<24x96xf32> to vector<24x32xf32>
    %155 = vector.extract_strided_slice %145 {offsets = [0, 32], sizes = [24, 32], strides = [1, 1]} : vector<24x96xf32> to vector<24x32xf32>
    %156 = arith.addf %154, %155 : vector<24x32xf32>
    %157 = arith.negf %156 : vector<24x32xf32>
    %158 = math.exp %157 : vector<24x32xf32>
    %cst_43 = arith.constant 1.000000e+00 : f32
    %159 = vector.broadcast %cst_43 : f32 to vector<24x32xf32>
    %160 = arith.addf %159, %158 : vector<24x32xf32>
    %161 = arith.divf %159, %160 : vector<24x32xf32>
    %162 = vector.extract_strided_slice %142 {offsets = [0, 64], sizes = [24, 32], strides = [1, 1]} : vector<24x96xf32> to vector<24x32xf32>
    %163 = vector.extract_strided_slice %145 {offsets = [0, 64], sizes = [24, 32], strides = [1, 1]} : vector<24x96xf32> to vector<24x32xf32>
    %164 = arith.mulf %153, %163 : vector<24x32xf32>
    %165 = arith.addf %162, %164 : vector<24x32xf32>
    %166 = math.tanh %165 : vector<24x32xf32>
    %cst_44 = arith.constant 1.000000e+00 : f32
    %167 = vector.broadcast %cst_44 : f32 to vector<24x32xf32>
    %168 = arith.subf %167, %161 : vector<24x32xf32>
    %169 = arith.mulf %168, %166 : vector<24x32xf32>
    %170 = arith.mulf %161, %139 : vector<24x32xf32>
    %171 = arith.addf %169, %170 : vector<24x32xf32>
    %c5_i32 = arith.constant 5 : i32
    %172 = arith.index_cast %c5_i32 : i32 to index
    %c0_45 = arith.constant 0 : index
    %c0_46 = arith.constant 0 : index
    %173 = vector.load %arg15[%172, %c0_45, %c0_46] : memref<8x24x96xf32, #tpu.memory_space<vmem>>, vector<1x24x96xf32>
    %174 = vector.shape_cast %173 : vector<1x24x96xf32> to vector<24x96xf32>
    %cst_47 = arith.constant dense<0.000000e+00> : vector<24x96xf32>
    %175 = tpu.matmul %171, %9, %cst_47 {dimension_numbers = #tpu.dot_dimension_numbers<[1], [0], [0], [1], [0, 0, 1, 1], [], []>} : vector<24x32xf32>, vector<32x96xf32>, vector<24x96xf32> -> vector<24x96xf32>
    %176 = vector.broadcast %10 : vector<1x96xf32> to vector<24x96xf32>
    %177 = arith.addf %175, %176 : vector<24x96xf32>
    %178 = vector.extract_strided_slice %174 {offsets = [0, 0], sizes = [24, 32], strides = [1, 1]} : vector<24x96xf32> to vector<24x32xf32>
    %179 = vector.extract_strided_slice %177 {offsets = [0, 0], sizes = [24, 32], strides = [1, 1]} : vector<24x96xf32> to vector<24x32xf32>
    %180 = arith.addf %178, %179 : vector<24x32xf32>
    %181 = arith.negf %180 : vector<24x32xf32>
    %182 = math.exp %181 : vector<24x32xf32>
    %cst_48 = arith.constant 1.000000e+00 : f32
    %183 = vector.broadcast %cst_48 : f32 to vector<24x32xf32>
    %184 = arith.addf %183, %182 : vector<24x32xf32>
    %185 = arith.divf %183, %184 : vector<24x32xf32>
    %186 = vector.extract_strided_slice %174 {offsets = [0, 32], sizes = [24, 32], strides = [1, 1]} : vector<24x96xf32> to vector<24x32xf32>
    %187 = vector.extract_strided_slice %177 {offsets = [0, 32], sizes = [24, 32], strides = [1, 1]} : vector<24x96xf32> to vector<24x32xf32>
    %188 = arith.addf %186, %187 : vector<24x32xf32>
    %189 = arith.negf %188 : vector<24x32xf32>
    %190 = math.exp %189 : vector<24x32xf32>
    %cst_49 = arith.constant 1.000000e+00 : f32
    %191 = vector.broadcast %cst_49 : f32 to vector<24x32xf32>
    %192 = arith.addf %191, %190 : vector<24x32xf32>
    %193 = arith.divf %191, %192 : vector<24x32xf32>
    %194 = vector.extract_strided_slice %174 {offsets = [0, 64], sizes = [24, 32], strides = [1, 1]} : vector<24x96xf32> to vector<24x32xf32>
    %195 = vector.extract_strided_slice %177 {offsets = [0, 64], sizes = [24, 32], strides = [1, 1]} : vector<24x96xf32> to vector<24x32xf32>
    %196 = arith.mulf %185, %195 : vector<24x32xf32>
    %197 = arith.addf %194, %196 : vector<24x32xf32>
    %198 = math.tanh %197 : vector<24x32xf32>
    %cst_50 = arith.constant 1.000000e+00 : f32
    %199 = vector.broadcast %cst_50 : f32 to vector<24x32xf32>
    %200 = arith.subf %199, %193 : vector<24x32xf32>
    %201 = arith.mulf %200, %198 : vector<24x32xf32>
    %202 = arith.mulf %193, %171 : vector<24x32xf32>
    %203 = arith.addf %201, %202 : vector<24x32xf32>
    %c6_i32 = arith.constant 6 : i32
    %204 = arith.index_cast %c6_i32 : i32 to index
    %c0_51 = arith.constant 0 : index
    %c0_52 = arith.constant 0 : index
    %205 = vector.load %arg15[%204, %c0_51, %c0_52] : memref<8x24x96xf32, #tpu.memory_space<vmem>>, vector<1x24x96xf32>
    %206 = vector.shape_cast %205 : vector<1x24x96xf32> to vector<24x96xf32>
    %cst_53 = arith.constant dense<0.000000e+00> : vector<24x96xf32>
    %207 = tpu.matmul %203, %9, %cst_53 {dimension_numbers = #tpu.dot_dimension_numbers<[1], [0], [0], [1], [0, 0, 1, 1], [], []>} : vector<24x32xf32>, vector<32x96xf32>, vector<24x96xf32> -> vector<24x96xf32>
    %208 = vector.broadcast %10 : vector<1x96xf32> to vector<24x96xf32>
    %209 = arith.addf %207, %208 : vector<24x96xf32>
    %210 = vector.extract_strided_slice %206 {offsets = [0, 0], sizes = [24, 32], strides = [1, 1]} : vector<24x96xf32> to vector<24x32xf32>
    %211 = vector.extract_strided_slice %209 {offsets = [0, 0], sizes = [24, 32], strides = [1, 1]} : vector<24x96xf32> to vector<24x32xf32>
    %212 = arith.addf %210, %211 : vector<24x32xf32>
    %213 = arith.negf %212 : vector<24x32xf32>
    %214 = math.exp %213 : vector<24x32xf32>
    %cst_54 = arith.constant 1.000000e+00 : f32
    %215 = vector.broadcast %cst_54 : f32 to vector<24x32xf32>
    %216 = arith.addf %215, %214 : vector<24x32xf32>
    %217 = arith.divf %215, %216 : vector<24x32xf32>
    %218 = vector.extract_strided_slice %206 {offsets = [0, 32], sizes = [24, 32], strides = [1, 1]} : vector<24x96xf32> to vector<24x32xf32>
    %219 = vector.extract_strided_slice %209 {offsets = [0, 32], sizes = [24, 32], strides = [1, 1]} : vector<24x96xf32> to vector<24x32xf32>
    %220 = arith.addf %218, %219 : vector<24x32xf32>
    %221 = arith.negf %220 : vector<24x32xf32>
    %222 = math.exp %221 : vector<24x32xf32>
    %cst_55 = arith.constant 1.000000e+00 : f32
    %223 = vector.broadcast %cst_55 : f32 to vector<24x32xf32>
    %224 = arith.addf %223, %222 : vector<24x32xf32>
    %225 = arith.divf %223, %224 : vector<24x32xf32>
    %226 = vector.extract_strided_slice %206 {offsets = [0, 64], sizes = [24, 32], strides = [1, 1]} : vector<24x96xf32> to vector<24x32xf32>
    %227 = vector.extract_strided_slice %209 {offsets = [0, 64], sizes = [24, 32], strides = [1, 1]} : vector<24x96xf32> to vector<24x32xf32>
    %228 = arith.mulf %217, %227 : vector<24x32xf32>
    %229 = arith.addf %226, %228 : vector<24x32xf32>
    %230 = math.tanh %229 : vector<24x32xf32>
    %cst_56 = arith.constant 1.000000e+00 : f32
    %231 = vector.broadcast %cst_56 : f32 to vector<24x32xf32>
    %232 = arith.subf %231, %225 : vector<24x32xf32>
    %233 = arith.mulf %232, %230 : vector<24x32xf32>
    %234 = arith.mulf %225, %203 : vector<24x32xf32>
    %235 = arith.addf %233, %234 : vector<24x32xf32>
    %c7_i32 = arith.constant 7 : i32
    %236 = arith.index_cast %c7_i32 : i32 to index
    %c0_57 = arith.constant 0 : index
    %c0_58 = arith.constant 0 : index
    %237 = vector.load %arg15[%236, %c0_57, %c0_58] : memref<8x24x96xf32, #tpu.memory_space<vmem>>, vector<1x24x96xf32>
    %238 = vector.shape_cast %237 : vector<1x24x96xf32> to vector<24x96xf32>
    %cst_59 = arith.constant dense<0.000000e+00> : vector<24x96xf32>
    %239 = tpu.matmul %235, %9, %cst_59 {dimension_numbers = #tpu.dot_dimension_numbers<[1], [0], [0], [1], [0, 0, 1, 1], [], []>} : vector<24x32xf32>, vector<32x96xf32>, vector<24x96xf32> -> vector<24x96xf32>
    %240 = vector.broadcast %10 : vector<1x96xf32> to vector<24x96xf32>
    %241 = arith.addf %239, %240 : vector<24x96xf32>
    %242 = vector.extract_strided_slice %238 {offsets = [0, 0], sizes = [24, 32], strides = [1, 1]} : vector<24x96xf32> to vector<24x32xf32>
    %243 = vector.extract_strided_slice %241 {offsets = [0, 0], sizes = [24, 32], strides = [1, 1]} : vector<24x96xf32> to vector<24x32xf32>
    %244 = arith.addf %242, %243 : vector<24x32xf32>
    %245 = arith.negf %244 : vector<24x32xf32>
    %246 = math.exp %245 : vector<24x32xf32>
    %cst_60 = arith.constant 1.000000e+00 : f32
    %247 = vector.broadcast %cst_60 : f32 to vector<24x32xf32>
    %248 = arith.addf %247, %246 : vector<24x32xf32>
    %249 = arith.divf %247, %248 : vector<24x32xf32>
    %250 = vector.extract_strided_slice %238 {offsets = [0, 32], sizes = [24, 32], strides = [1, 1]} : vector<24x96xf32> to vector<24x32xf32>
    %251 = vector.extract_strided_slice %241 {offsets = [0, 32], sizes = [24, 32], strides = [1, 1]} : vector<24x96xf32> to vector<24x32xf32>
    %252 = arith.addf %250, %251 : vector<24x32xf32>
    %253 = arith.negf %252 : vector<24x32xf32>
    %254 = math.exp %253 : vector<24x32xf32>
    %cst_61 = arith.constant 1.000000e+00 : f32
    %255 = vector.broadcast %cst_61 : f32 to vector<24x32xf32>
    %256 = arith.addf %255, %254 : vector<24x32xf32>
    %257 = arith.divf %255, %256 : vector<24x32xf32>
    %258 = vector.extract_strided_slice %238 {offsets = [0, 64], sizes = [24, 32], strides = [1, 1]} : vector<24x96xf32> to vector<24x32xf32>
    %259 = vector.extract_strided_slice %241 {offsets = [0, 64], sizes = [24, 32], strides = [1, 1]} : vector<24x96xf32> to vector<24x32xf32>
    %260 = arith.mulf %249, %259 : vector<24x32xf32>
    %261 = arith.addf %258, %260 : vector<24x32xf32>
    %262 = math.tanh %261 : vector<24x32xf32>
    %cst_62 = arith.constant 1.000000e+00 : f32
    %263 = vector.broadcast %cst_62 : f32 to vector<24x32xf32>
    %264 = arith.subf %263, %257 : vector<24x32xf32>
    %265 = arith.mulf %264, %262 : vector<24x32xf32>
    %266 = arith.mulf %257, %235 : vector<24x32xf32>
    %267 = arith.addf %265, %266 : vector<24x32xf32>
    %c8_i32 = arith.constant 8 : i32
    %c0_63 = arith.constant 0 : index
    %c0_64 = arith.constant 0 : index
    %268 = vector.load %arg6[%c0_63, %c0_64] : memref<24x24xf32, #tpu.memory_space<vmem>>, vector<24x24xf32>
    %c0_65 = arith.constant 0 : index
    %c0_66 = arith.constant 0 : index
    %269 = vector.load %arg7[%c0_65, %c0_66] : memref<32x32xf32, #tpu.memory_space<vmem>>, vector<32x32xf32>
    %cst_67 = arith.constant dense<0.000000e+00> : vector<24x32xf32>
    %270 = tpu.matmul %267, %269, %cst_67 {dimension_numbers = #tpu.dot_dimension_numbers<[1], [0], [0], [1], [0, 0, 1, 1], [], []>} : vector<24x32xf32>, vector<32x32xf32>, vector<24x32xf32> -> vector<24x32xf32>
    %cst_68 = arith.constant dense<0.000000e+00> : vector<24x32xf32>
    %271 = tpu.matmul %268, %270, %cst_68 {dimension_numbers = #tpu.dot_dimension_numbers<[1], [0], [0], [1], [0, 0, 1, 1], [], []>} : vector<24x24xf32>, vector<24x32xf32>, vector<24x32xf32> -> vector<24x32xf32>
    %c0_69 = arith.constant 0 : index
    %c0_70 = arith.constant 0 : index
    %272 = vector.load %arg8[%c0_69, %c0_70] : memref<1x32xf32, #tpu.memory_space<vmem>>, vector<1x32xf32>
    %273 = vector.broadcast %272 : vector<1x32xf32> to vector<24x32xf32>
    %274 = arith.addf %271, %273 : vector<24x32xf32>
    %cst_71 = arith.constant 0.000000e+00 : f32
    %275 = vector.broadcast %cst_71 : f32 to vector<24x32xf32>
    %276 = arith.maximumf %274, %275 : vector<24x32xf32>
    %c0_72 = arith.constant 0 : index
    %c0_73 = arith.constant 0 : index
    %277 = vector.load %arg9[%c0_72, %c0_73] : memref<32x32xf32, #tpu.memory_space<vmem>>, vector<32x32xf32>
    %cst_74 = arith.constant dense<0.000000e+00> : vector<24x32xf32>
    %278 = tpu.matmul %276, %277, %cst_74 {dimension_numbers = #tpu.dot_dimension_numbers<[1], [0], [0], [1], [0, 0, 1, 1], [], []>} : vector<24x32xf32>, vector<32x32xf32>, vector<24x32xf32> -> vector<24x32xf32>
    %cst_75 = arith.constant dense<0.000000e+00> : vector<24x32xf32>
    %279 = tpu.matmul %268, %278, %cst_75 {dimension_numbers = #tpu.dot_dimension_numbers<[1], [0], [0], [1], [0, 0, 1, 1], [], []>} : vector<24x24xf32>, vector<24x32xf32>, vector<24x32xf32> -> vector<24x32xf32>
    %c0_76 = arith.constant 0 : index
    %c0_77 = arith.constant 0 : index
    %280 = vector.load %arg10[%c0_76, %c0_77] : memref<1x32xf32, #tpu.memory_space<vmem>>, vector<1x32xf32>
    %281 = vector.broadcast %280 : vector<1x32xf32> to vector<24x32xf32>
    %282 = arith.addf %279, %281 : vector<24x32xf32>
    %cst_78 = arith.constant 0.000000e+00 : f32
    %283 = vector.broadcast %cst_78 : f32 to vector<24x32xf32>
    %284 = arith.maximumf %282, %283 : vector<24x32xf32>
    %c0_79 = arith.constant 0 : index
    %c0_80 = arith.constant 0 : index
    %285 = vector.load %arg11[%c0_79, %c0_80] : memref<2x24xf32, #tpu.memory_space<vmem>>, vector<2x24xf32>
    %cst_81 = arith.constant dense<0.000000e+00> : vector<2x32xf32>
    %286 = tpu.matmul %285, %284, %cst_81 {dimension_numbers = #tpu.dot_dimension_numbers<[1], [0], [0], [1], [0, 0, 1, 1], [], []>} : vector<2x24xf32>, vector<24x32xf32>, vector<2x32xf32> -> vector<2x32xf32>
    %c0_82 = arith.constant 0 : index
    %c0_83 = arith.constant 0 : index
    %287 = vector.load %arg12[%c0_82, %c0_83] : memref<32x4xf32, #tpu.memory_space<vmem>>, vector<32x4xf32>
    %cst_84 = arith.constant dense<0.000000e+00> : vector<2x4xf32>
    %288 = tpu.matmul %286, %287, %cst_84 {dimension_numbers = #tpu.dot_dimension_numbers<[1], [0], [0], [1], [0, 0, 1, 1], [], []>} : vector<2x32xf32>, vector<32x4xf32>, vector<2x4xf32> -> vector<2x4xf32>
    %c0_85 = arith.constant 0 : index
    %c0_86 = arith.constant 0 : index
    %289 = vector.load %arg13[%c0_85, %c0_86] : memref<1x4xf32, #tpu.memory_space<vmem>>, vector<1x4xf32>
    %290 = vector.broadcast %289 : vector<1x4xf32> to vector<2x4xf32>
    %291 = arith.addf %288, %290 : vector<2x4xf32>
    %c0_87 = arith.constant 0 : index
    %c0_88 = arith.constant 0 : index
    %292 = vector.load %arg14[%c0_87, %c0_88] : memref<2x4xf32, #tpu.memory_space<vmem>>, vector<2x4xf32>
    tpu.vector_store %arg14[%c0_87, %c0_88], %291 {strides = array<i32>} : memref<2x4xf32, #tpu.memory_space<vmem>>, vector<2x4xf32>,
    return
  }
  func.func @transform_0(%arg0: i32) -> (i32, i32, i32) {
    %c0_i32 = arith.constant 0 : i32
    %c0_i32_0 = arith.constant 0 : i32
    %c0_i32_1 = arith.constant 0 : i32
    %c0_i32_2 = arith.constant 0 : i32
    return %c0_i32, %c0_i32_0, %c0_i32_1 : i32, i32, i32
  }
  func.func @transform_1(%arg0: i32) -> (i32, i32, i32) {
    %c0_i32 = arith.constant 0 : i32
    %c0_i32_0 = arith.constant 0 : i32
    %c0_i32_1 = arith.constant 0 : i32
    %c0_i32_2 = arith.constant 0 : i32
    return %c0_i32, %c0_i32_0, %c0_i32_1 : i32, i32, i32
  }
  func.func @transform_2(%arg0: i32) -> (i32, i32, i32) {
    %c0_i32 = arith.constant 0 : i32
    %c0_i32_0 = arith.constant 0 : i32
    %c0_i32_1 = arith.constant 0 : i32
    %c0_i32_2 = arith.constant 0 : i32
    return %c0_i32, %c0_i32_0, %c0_i32_1 : i32, i32, i32
  }
  func.func @transform_3(%arg0: i32) -> (i32, i32) {
    %c0_i32 = arith.constant 0 : i32
    %c0_i32_0 = arith.constant 0 : i32
    %c0_i32_1 = arith.constant 0 : i32
    return %c0_i32, %c0_i32_0 : i32, i32
  }
  func.func @transform_4(%arg0: i32) -> (i32, i32) {
    %c0_i32 = arith.constant 0 : i32
    %c0_i32_0 = arith.constant 0 : i32
    %c0_i32_1 = arith.constant 0 : i32
    return %c0_i32, %c0_i32_0 : i32, i32
  }
  func.func @transform_5(%arg0: i32) -> (i32, i32) {
    %c0_i32 = arith.constant 0 : i32
    %c0_i32_0 = arith.constant 0 : i32
    %c0_i32_1 = arith.constant 0 : i32
    return %c0_i32, %c0_i32_0 : i32, i32
  }
  func.func @transform_6(%arg0: i32) -> (i32, i32) {
    %c0_i32 = arith.constant 0 : i32
    %c0_i32_0 = arith.constant 0 : i32
    %c0_i32_1 = arith.constant 0 : i32
    return %c0_i32, %c0_i32_0 : i32, i32
  }
  func.func @transform_7(%arg0: i32) -> (i32, i32) {
    %c0_i32 = arith.constant 0 : i32
    %c0_i32_0 = arith.constant 0 : i32
    %c0_i32_1 = arith.constant 0 : i32
    return %c0_i32, %c0_i32_0 : i32, i32
  }
  func.func @transform_8(%arg0: i32) -> (i32, i32) {
    %c0_i32 = arith.constant 0 : i32
    %c0_i32_0 = arith.constant 0 : i32
    %c0_i32_1 = arith.constant 0 : i32
    return %c0_i32, %c0_i32_0 : i32, i32
  }
  func.func @transform_9(%arg0: i32) -> (i32, i32) {
    %c0_i32 = arith.constant 0 : i32
    %c0_i32_0 = arith.constant 0 : i32
    %c0_i32_1 = arith.constant 0 : i32
    return %c0_i32, %c0_i32_0 : i32, i32
  }
  func.func @transform_10(%arg0: i32) -> (i32, i32) {
    %c0_i32 = arith.constant 0 : i32
    %c0_i32_0 = arith.constant 0 : i32
    %c0_i32_1 = arith.constant 0 : i32
    return %c0_i32, %c0_i32_0 : i32, i32
  }
  func.func @transform_11(%arg0: i32) -> (i32, i32) {
    %c0_i32 = arith.constant 0 : i32
    %c0_i32_0 = arith.constant 0 : i32
    %c0_i32_1 = arith.constant 0 : i32
    return %c0_i32, %c0_i32_0 : i32, i32
  }
  func.func @transform_12(%arg0: i32) -> (i32, i32) {
    %c0_i32 = arith.constant 0 : i32
    %c0_i32_0 = arith.constant 0 : i32
    %c0_i32_1 = arith.constant 0 : i32
    return %c0_i32, %c0_i32_0 : i32, i32
  }
  func.func @transform_13(%arg0: i32) -> (i32, i32) {
    %c0_i32 = arith.constant 0 : i32
    %c0_i32_0 = arith.constant 0 : i32
    %c0_i32_1 = arith.constant 0 : i32
    return %c0_i32, %c0_i32_0 : i32, i32
  }
}

</mosaic_0001>

<bundles_post_ra>
// kernel: ecg_rgnn_forward.1
= control target key start
LH: loop header
LB: loop body
LE: loop exit
PB: predicated region body
PF: predicated region fallthrough
CT: control target
= control target key end

     0   :  { %v2881_v3 = vmov 0.0|0.0   ;;  %vm2882_vm0 = vmmov 0   ;;  %v2883_v6 = vmov 0.0   ;;  %v2884_v8 = vmov 0   ;;  %s3579_s0 = inlined_call_operand.vmem [shape: f32[8,24,1], index: 0, kind: input, shape index: {}]   ;;  %s3580_s1 = inlined_call_operand.vmem [shape: f32[1,1,96], index: 1, kind: input, shape index: {}]   ;;  %s3581_s2 = inlined_call_operand.vmem [shape: f32[1,1,96], index: 2, kind: input, shape index: {}]   ;;  %s3582_s3 = inlined_call_operand.vmem [shape: f32[32,96], index: 3, kind: input, shape index: {}]   ;;  %s3583_s4 = inlined_call_operand.vmem [shape: f32[1,96], index: 4, kind: input, shape index: {}]   ;;  %s3584_s5 = inlined_call_operand.vmem [shape: f32[24,24], index: 5, kind: input, shape index: {}]   ;;  %s3585_s6 = inlined_call_operand.vmem [shape: f32[32,32], index: 6, kind: input, shape index: {}]   ;;  %s3586_s7 = inlined_call_operand.vmem [shape: f32[1,32], index: 7, kind: input, shape index: {}]   ;;  %s3587_s8 = inlined_call_operand.vmem [shape: f32[32,32], index: 8, kind: input, shape index: {}]   ;;  %s3588_s9 = inlined_call_operand.vmem [shape: f32[1,32], index: 9, kind: input, shape index: {}]   ;;  %s3589_s10 = inlined_call_operand.vmem [shape: f32[2,24], index: 10, kind: input, shape index: {}]   ;;  %s3590_s11 = inlined_call_operand.vmem [shape: f32[32,4], index: 11, kind: input, shape index: {}]   ;;  %s3591_s12 = inlined_call_operand.vmem [shape: f32[1,4], index: 12, kind: input, shape index: {}]   ;;  %s3592_s13 = inlined_call_operand.hbm [shape: f32[2,4], index: 13, kind: output, shape index: {}]  }
   0x1   :  { %v276_v0 = vld [vmem:[%s3582_s3] sm:$0xff]  ;;  %v277_v1 = vld [vmem:[%s3582_s3 + $0x8] sm:$0xff]  ;;  %v278_v2 = vld [vmem:[%s3582_s3 + $0x10] sm:$0xff]  ;;  %2626 = vmatprep.subr.bf16.mxu0 %v2881_v3  ;;  %2414 = vmatprep.mubr.msk.f32.mxu0 %vm2882_vm0, %v2883_v6 }
   0x2   :  { %v2968_v4 = vpack.c.bf16 %v277_v1, %v276_v0  ;;  %v279_v5 = vld [vmem:[%s3582_s3 + $0x18] sm:$0xff]  ;;  %v45_v7 = vld [vmem:[%s3579_s0] sm:$0xff]  ;;  %2708 = vset.pattern.permute.xlu0 %v2884_v8  ;;  %2709 = vset.pattern.permute.xlu1 %v2884_v8  ;;  %v47_v9 = vld [vmem:[%s3579_s0 + $0x10] sm:$0xff] }
   0x3   :  { %v2982_v10 = vpack.c.bf16 %v279_v5, %v278_v2  ;;  %72 = vperm.xlu0 %2708, %v45_v7  }
   0x4   :  { %2628 = vmatpush3.bf16.msra.mxu0 %v2968_v4 }
   0x5   :  { %18 = vsyncpa [#allocation4], 0  ;;  %2629 = vmatprep.subr.bf16.mxu0 %v2881_v3  ;;  %v46_v11 = vld [vmem:[%s3579_s0 + $0x8] sm:$0xff]  ;;  %82 = vperm.xlu1 %2709, %v47_v9   ;;  %v3013_v12 = vld [vmem:[%s3580_s1] ss:$0 sm:$0xff]  ;;  %vm251_vm1 = vcmask 785408  }
   0x6   :  { %2632 = vmatprep.subr.bf16.mxu1 %v2881_v3  ;;  %2431 = vmatprep.mubr.msk.f32.mxu1 %vm2882_vm0, %v2883_v6  ;;  %v3018_v13 = vld [vmem:[%s3581_s2] ss:$0 sm:$0xff]  ;;  %s2885_s27 = smov 64   ;;  %s2886_s28 = smov 96   ;;  %vm290_vm2 = vcmask 261120   ;;  %vm1800_vm3 = vcmask 195584  }
   0x7   :  { %2634 = vmatpush3.bf16.msra.mxu1 %v2968_v4  ;;  %77 = vperm.xlu0 %2708, %v46_v11   ;;  %v3032_v23 = vld [vmem:[%s3583_s4] ss:$0 sm:$0xff]  ;;  %vm2234_vm4 = vcmask 25600  }
   0x8   :  { %2631 = vmatpush3.bf16.msra.mxu0 %v2982_v10  ;;  %2635 = vmatprep.subr.bf16.mxu1 %v2881_v3 }
   0x9   :  { %2638 = vmatprep.subr.bf16.mxu0 %v2881_v3 }
   0xb   :  { %2415 = vmatmul.mubr.f32.vlgmr.msra.gmra.mrb[0].mxu0 %v2883_v6  ;;  %2637 = vmatpush3.bf16.msra.mxu1 %v2982_v10 }
   0xc   :  { %2417 = vmatprep.mubr.msk.f32.mxu0 %vm2882_vm0, %v2883_v6  ;;  %2640 = vmatpush3.bf16.msra.mxu0 %v2968_v4 }
   0xd   :  { %2641 = vmatprep.subr.bf16.mxu0 %v2881_v3  ;;  %2644 = vmatprep.subr.bf16.mxu1 %v2881_v3 }
   0xf   :  { %2418 = vmatmul.mubr.f32.gmra.mrb[2].mxu0 %v2883_v6 }
  0x10   :  { %2420 = vmatprep.mubr.msk.f32.mxu0 %vm2882_vm0, %v2883_v6  ;;  %2643 = vmatpush3.bf16.msra.mxu0 %v2982_v10 }
  0x11   :  { %2650 = vmatprep.subr.bf16.mxu0 %v2881_v3 }
  0x13   :  { %2421 = vmatmul.mubr.f32.gmra.mrb[4].mxu0 %v2883_v6 }
  0x14   :  { %2448 = vmatprep.mubr.msk.f32.mxu0 %vm2882_vm0, %v2883_v6 }
  0x82   :  { %v73_v14 = vpop.permute.xlu0 %72 }
  0x83   :  { %v196_v15 = vmul.f32 %v3013_v12, %v73_v14 }
  0x84   :  { %v83_v16 = vpop.permute.xlu1 %82 }
  0x85   :  { %v198_v17 = vmul.f32 %v3013_v12, %v83_v16  ;;  %v227_v18 = vadd.f32 %v3018_v13, %v196_v15 }
  0x86   :  { %v78_v19 = vpop.permute.xlu0 %77 }
  0x87   :  { %v229_v20 = vadd.f32 %v3018_v13, %v198_v17  ;;  %252 = vst.msk [vmem:[#allocation2] sm:$0xff] %vm251_vm1, %v227_v18  ;;  %v197_v21 = vmul.f32 %v3013_v12, %v78_v19 }
  0x89   :  { %254 = vst.msk [vmem:[#allocation2 + $0x10] sm:$0xff] %vm251_vm1, %v229_v20  ;;  %v228_v22 = vadd.f32 %v3018_v13, %v197_v21 }
  0x8b   :  { %253 = vst.msk [vmem:[#allocation2 + $0x8] sm:$0xff] %vm251_vm1, %v228_v22  ;;  %v48_v22 = vld [vmem:[%s3579_s0 + $0x18] sm:$0xff] }
  0x8e   :  { %v281_v33 = vld [vmem:[#allocation2] sm:$0xff] }
  0x90   :  { %v283_v38 = vld [vmem:[#allocation2 + $0x10] sm:$0xff] }
  0x92   :  { %v282_v35 = vld [vmem:[#allocation2 + $0x8] sm:$0xff] }
  0xde   :  { %v360_v24 = vpop.f32.mrb[0].mxu0 }
  0xdf   :  { %v361_v25 = vadd.f32 %v3032_v23, %v360_v24  ;;  %v2416_v26 = vpop.f32.mrb[1].mxu0 }
  0xe0   :  { %v50_v26 = vld [vmem:[%s3579_s0 + $0x28] sm:$0xff] }
  0xe1   :  { %398 = vrot.lane.b32.xlu1 %v361_v25, %s2885_s27  ;;  %v374_v34 = vadd.f32 %v361_v25, %v281_v33  ;;  %v49_v25 = vld [vmem:[%s3579_s0 + $0x20] sm:$0xff] }
  0xe2   :  { %v365_v27 = vpop.f32.mrb[2].mxu0 }
  0xe3   :  { %v366_v28 = vadd.f32 %v3032_v23, %v365_v27  ;;  %v2419_v29 = vpop.f32.mrb[3].mxu0  ;;  %v2253_v36 = vmul.f32 -1.442695, %v374_v34 }
  0xe5   :  { %400 = vrot.lane.b32.xlu0 %v366_v28, %s2885_s27  ;;  %v375_v37 = vadd.f32 %v366_v28, %v282_v35  ;;  %2710 = vpow2.f32 %v2253_v36 }
  0xe6   :  { %v370_v30 = vpop.f32.mrb[4].mxu0 }
  0xe7   :  { %v371_v31 = vadd.f32 %v3032_v23, %v370_v30  ;;  %v2422_v32 = vpop.f32.mrb[5].mxu0  ;;  %v2254_v39 = vmul.f32 -1.442695, %v375_v37 }
  0xe9   :  { %402 = vrot.lane.b32.xlu1 %v371_v31, %s2885_s27  ;;  %v376_v40 = vadd.f32 %v371_v31, %v283_v38  ;;  %2712 = vpow2.f32 %v2254_v39 }
  0xeb   :  { %v2255_v41 = vmul.f32 -1.442695, %v376_v40 }
  0xed   :  { %2714 = vpow2.f32 %v2255_v41 }
  0xef   :  { %v2711_v42 = vpop.eup %2710 }
  0xf0   :  { %v386_v43 = vadd.f32 1.0, %v2711_v42 }
  0xf2   :  { %2716 = vrcp.f32 %v386_v43 }
  0xf3   :  { %v2713_v44 = vpop.eup %2712 }
  0xf4   :  { %v387_v45 = vadd.f32 1.0, %v2713_v44 }
  0xf6   :  { %2718 = vrcp.f32 %v387_v45 }
  0xf7   :  { %v2715_v46 = vpop.eup %2714 }
  0xf8   :  { %v388_v47 = vadd.f32 1.0, %v2715_v46 }
  0xfa   :  { %2720 = vrcp.f32 %v388_v47 }
  0xfc   :  { %v2717_v48 = vpop.eup %2716 }
  0xfd   :  { %v428_v2 = vsub.f32 1.0, %v2717_v48  ;;  %v446_v7 = vmul.f32 0.0, %v2717_v48 }
 0x100   :  { %v2719_v51 = vpop.eup %2718 }
 0x101   :  { %v429_v11 = vsub.f32 1.0, %v2719_v51  ;;  %v447_v15 = vmul.f32 0.0, %v2719_v51 }
 0x104   :  { %v2721_v54 = vpop.eup %2720 }
 0x105   :  { %v430_v18 = vsub.f32 1.0, %v2721_v54  ;;  %v448_v20 = vmul.f32 0.0, %v2721_v54 }
 0x153   :  { %v399_v49 = vpop.permute.xlu1 %398 }
 0x154   :  { %v407_v50 = vmul.f32 %v2717_v48, %v399_v49 }
 0x156   :  { %413 = vrot.lane.b32.xlu0 %v407_v50, %s2885_s27 }
 0x157   :  { %v401_v52 = vpop.permute.xlu0 %400 }
 0x158   :  { %v408_v53 = vmul.f32 %v2719_v51, %v401_v52 }
 0x15a   :  { %415 = vrot.lane.b32.xlu1 %v408_v53, %s2885_s27 }
 0x15b   :  { %v403_v55 = vpop.permute.xlu1 %402 }
 0x15c   :  { %v409_v56 = vmul.f32 %v2721_v54, %v403_v55 }
 0x15e   :  { %417 = vrot.lane.b32.xlu0 %v409_v56, %s2885_s27 }
 0x1c8   :  { %v414_v57 = vpop.permute.xlu0 %413 }
 0x1c9   :  { %v422_v58 = vadd.f32 %v414_v57, %v281_v33 }
 0x1cb   :  { %2722 = vtanh.f32 %v422_v58 }
 0x1cc   :  { %v416_v59 = vpop.permute.xlu1 %415 }
 0x1cd   :  { %v423_v60 = vadd.f32 %v416_v59, %v282_v35 }
 0x1cf   :  { %2724 = vtanh.f32 %v423_v60 }
 0x1d0   :  { %v418_v61 = vpop.permute.xlu0 %417 }
 0x1d1   :  { %v424_v62 = vadd.f32 %v418_v61, %v283_v38 }
 0x1d3   :  { %2726 = vtanh.f32 %v424_v62 }
 0x1d5   :  { %v2723_v63 = vpop.eup %2722 }
 0x1d6   :  { %434 = vrot.lane.b32.xlu1 %v2723_v63, %s2886_s28 }
 0x1d9   :  { %v2725_v0 = vpop.eup %2724 }
 0x1da   :  { %436 = vrot.lane.b32.xlu0 %v2725_v0, %s2886_s28 }
 0x1dd   :  { %v2727_v1 = vpop.eup %2726 }
 0x1de   :  { %438 = vrot.lane.b32.xlu1 %v2727_v1, %s2886_s28 }
 0x248   :  { %v435_v5 = vpop.permute.xlu1 %434 }
 0x249   :  { %v443_v8 = vmul.f32 %v435_v5, %v428_v2 }
 0x24b   :  { %v3046_v9 = vadd.f32 %v446_v7, %v443_v8 }
 0x24c   :  { %v437_v14 = vpop.permute.xlu0 %436 }
 0x24d   :  { %v444_v16 = vmul.f32 %v437_v14, %v429_v11  ;;  %459 = vrot.lane.b32.xlu0 %v3046_v9, %s2886_s28 }
 0x24f   :  { %v3050_v17 = vadd.f32 %v447_v15, %v444_v16 }
 0x250   :  { %v439_v19 = vpop.permute.xlu1 %438 }
 0x251   :  { %v445_v21 = vmul.f32 %v439_v19, %v430_v18  ;;  %461 = vrot.lane.b32.xlu1 %v3050_v17, %s2886_s28 }
 0x253   :  { %v3057_v24 = vadd.f32 %v448_v20, %v445_v21 }
 0x255   :  { %463 = vrot.lane.b32.xlu0 %v3057_v24, %s2886_s28  ;;  %87 = vperm.xlu1 %2709, %v48_v22  }
 0x259   :  { %92 = vperm.xlu0 %2708, %v49_v25   ;;  %97 = vperm.xlu1 %2709, %v50_v26  }
 0x2bf   :  { %v460_v27 = vpop.permute.xlu0 %459 }
 0x2c0   :  { %2432 = vmatmul.mubr.msk.f32.vlgmr.msra.gmra.mrb[0].mxu1 %vm290_vm2, %v460_v27 }
 0x2c1   :  { %2434 = vmatprep.mubr.msk.f32.mxu1 %vm2882_vm0, %v2883_v6  ;;  %2646 = vmatpush3.bf16.msra.mxu1 %v2968_v4 }
 0x2c2   :  { %2647 = vmatprep.subr.bf16.mxu1 %v2881_v3 }
 0x2c3   :  { %v462_v28 = vpop.permute.xlu1 %461 }
 0x2c4   :  { %2435 = vmatmul.mubr.msk.f32.gmra.mrb[2].mxu1 %vm290_vm2, %v462_v28 }
 0x2c5   :  { %2437 = vmatprep.mubr.msk.f32.mxu1 %vm2882_vm0, %v2883_v6  ;;  %2649 = vmatpush3.bf16.msra.mxu1 %v2982_v10 }
 0x2c6   :  { %2656 = vmatprep.subr.bf16.mxu1 %v2881_v3 }
 0x2c7   :  { %v464_v29 = vpop.permute.xlu0 %463 }
 0x2c8   :  { %2438 = vmatmul.mubr.msk.f32.gmra.mrb[4].mxu1 %vm290_vm2, %v464_v29 }
 0x2c9   :  { %2465 = vmatprep.mubr.msk.f32.mxu1 %vm2882_vm0, %v2883_v6 }
 0x2d4   :  { %v88_v30 = vpop.permute.xlu1 %87 }
 0x2d5   :  { %v199_v31 = vmul.f32 %v3013_v12, %v88_v30 }
 0x2d7   :  { %v230_v32 = vadd.f32 %v3018_v13, %v199_v31 }
 0x2d8   :  { %v98_v33 = vpop.permute.xlu1 %97  ;;  %v93_v34 = vpop.permute.xlu0 %92 }
 0x2d9   :  { %255 = vst.msk [vmem:[#allocation2 + $0x18] sm:$0xff] %vm251_vm1, %v230_v32  ;;  %v201_v35 = vmul.f32 %v3013_v12, %v98_v33  ;;  %v200_v36 = vmul.f32 %v3013_v12, %v93_v34 }
 0x2db   :  { %v232_v37 = vadd.f32 %v3018_v13, %v201_v35  ;;  %v231_v38 = vadd.f32 %v3018_v13, %v200_v36 }
 0x2dd   :  { %257 = vst.msk [vmem:[#allocation2 + $0x28] sm:$0xff] %vm251_vm1, %v232_v37  ;;  %256 = vst.msk [vmem:[#allocation2 + $0x20] sm:$0xff] %vm251_vm1, %v231_v38 }
 0x2e0   :  { %v453_v48 = vld [vmem:[#allocation2 + $0x18] sm:$0xff] }
 0x2e4   :  { %v454_v50 = vld [vmem:[#allocation2 + $0x20] sm:$0xff]  ;;  %v455_v53 = vld [vmem:[#allocation2 + $0x28] sm:$0xff] }
 0x393   :  { %v537_v39 = vpop.f32.mrb[0].mxu1 }
 0x394   :  { %v538_v40 = vadd.f32 %v3032_v23, %v537_v39  ;;  %v2433_v41 = vpop.f32.mrb[1].mxu1 }
 0x396   :  { %575 = vrot.lane.b32.xlu0 %v538_v40, %s2885_s27  ;;  %v551_v49 = vadd.f32 %v538_v40, %v453_v48 }
 0x397   :  { %v542_v42 = vpop.f32.mrb[2].mxu1 }
 0x398   :  { %v543_v43 = vadd.f32 %v3032_v23, %v542_v42  ;;  %v2436_v44 = vpop.f32.mrb[3].mxu1  ;;  %v2259_v51 = vmul.f32 -1.442695, %v551_v49 }
 0x39a   :  { %577 = vrot.lane.b32.xlu1 %v543_v43, %s2885_s27  ;;  %v552_v52 = vadd.f32 %v543_v43, %v454_v50  ;;  %2728 = vpow2.f32 %v2259_v51 }
 0x39b   :  { %v547_v45 = vpop.f32.mrb[4].mxu1 }
 0x39c   :  { %v548_v46 = vadd.f32 %v3032_v23, %v547_v45  ;;  %v2439_v47 = vpop.f32.mrb[5].mxu1  ;;  %v2260_v54 = vmul.f32 -1.442695, %v552_v52 }
 0x39e   :  { %579 = vrot.lane.b32.xlu0 %v548_v46, %s2885_s27  ;;  %v553_v55 = vadd.f32 %v548_v46, %v455_v53  ;;  %2730 = vpow2.f32 %v2260_v54 }
 0x3a0   :  { %v2261_v56 = vmul.f32 -1.442695, %v553_v55 }
 0x3a2   :  { %2732 = vpow2.f32 %v2261_v56 }
 0x3a4   :  { %v2729_v57 = vpop.eup %2728 }
 0x3a5   :  { %v563_v58 = vadd.f32 1.0, %v2729_v57 }
 0x3a7   :  { %2734 = vrcp.f32 %v563_v58 }
 0x3a8   :  { %v2731_v59 = vpop.eup %2730 }
 0x3a9   :  { %v564_v60 = vadd.f32 1.0, %v2731_v59 }
 0x3ab   :  { %2736 = vrcp.f32 %v564_v60 }
 0x3ac   :  { %v2733_v61 = vpop.eup %2732 }
 0x3ad   :  { %v565_v62 = vadd.f32 1.0, %v2733_v61 }
 0x3af   :  { %2738 = vrcp.f32 %v565_v62 }
 0x3b1   :  { %v2735_v63 = vpop.eup %2734 }
 0x3b2   :  { %v605_v27 = vsub.f32 1.0, %v2735_v63  ;;  %v623_v29 = vmul.f32 %v2735_v63, %v3046_v9  ;;  %v51_v9 = vld [vmem:[%s3579_s0 + $0x30] sm:$0xff] }
 0x3b5   :  { %v2737_v2 = vpop.eup %2736 }
 0x3b6   :  { %v606_v32 = vsub.f32 1.0, %v2737_v2  ;;  %v624_v34 = vmul.f32 %v2737_v2, %v3050_v17  ;;  %v53_v17 = vld [vmem:[%s3579_s0 + $0x40] sm:$0xff] }
 0x3b9   :  { %v2739_v8 = vpop.eup %2738 }
 0x3ba   :  { %v607_v37 = vsub.f32 1.0, %v2739_v8  ;;  %v625_v39 = vmul.f32 %v2739_v8, %v3057_v24  ;;  %v52_v24 = vld [vmem:[%s3579_s0 + $0x38] sm:$0xff] }
 0x408   :  { %v576_v0 = vpop.permute.xlu0 %575 }
 0x409   :  { %v584_v1 = vmul.f32 %v2735_v63, %v576_v0 }
 0x40b   :  { %590 = vrot.lane.b32.xlu1 %v584_v1, %s2885_s27 }
 0x40c   :  { %v578_v5 = vpop.permute.xlu1 %577 }
 0x40d   :  { %v585_v7 = vmul.f32 %v2737_v2, %v578_v5 }
 0x40f   :  { %592 = vrot.lane.b32.xlu0 %v585_v7, %s2885_s27 }
 0x410   :  { %v580_v11 = vpop.permute.xlu0 %579 }
 0x411   :  { %v586_v14 = vmul.f32 %v2739_v8, %v580_v11 }
 0x413   :  { %594 = vrot.lane.b32.xlu1 %v586_v14, %s2885_s27 }
 0x47d   :  { %v591_v15 = vpop.permute.xlu1 %590 }
 0x47e   :  { %v599_v16 = vadd.f32 %v591_v15, %v453_v48 }
 0x480   :  { %2740 = vtanh.f32 %v599_v16 }
 0x481   :  { %v593_v18 = vpop.permute.xlu0 %592 }
 0x482   :  { %v600_v19 = vadd.f32 %v593_v18, %v454_v50 }
 0x484   :  { %2742 = vtanh.f32 %v600_v19 }
 0x485   :  { %v595_v20 = vpop.permute.xlu1 %594 }
 0x486   :  { %v601_v21 = vadd.f32 %v595_v20, %v455_v53 }
 0x488   :  { %2744 = vtanh.f32 %v601_v21 }
 0x48a   :  { %v2741_v22 = vpop.eup %2740 }
 0x48b   :  { %611 = vrot.lane.b32.xlu0 %v2741_v22, %s2886_s28 }
 0x48e   :  { %v2743_v25 = vpop.eup %2742 }
 0x48f   :  { %613 = vrot.lane.b32.xlu1 %v2743_v25, %s2886_s28 }
 0x492   :  { %v2745_v26 = vpop.eup %2744 }
 0x493   :  { %615 = vrot.lane.b32.xlu0 %v2745_v26, %s2886_s28 }
 0x4fd   :  { %v612_v28 = vpop.permute.xlu0 %611 }
 0x4fe   :  { %v620_v30 = vmul.f32 %v612_v28, %v605_v27 }
 0x500   :  { %v3102_v31 = vadd.f32 %v623_v29, %v620_v30 }
 0x501   :  { %v614_v33 = vpop.permute.xlu1 %613 }
 0x502   :  { %v621_v35 = vmul.f32 %v614_v33, %v606_v32  ;;  %636 = vrot.lane.b32.xlu1 %v3102_v31, %s2886_s28 }
 0x504   :  { %v3107_v36 = vadd.f32 %v624_v34, %v621_v35 }
 0x505   :  { %v616_v38 = vpop.permute.xlu0 %615 }
 0x506   :  { %v622_v40 = vmul.f32 %v616_v38, %v607_v37  ;;  %638 = vrot.lane.b32.xlu0 %v3107_v36, %s2886_s28 }
 0x508   :  { %v3115_v41 = vadd.f32 %v625_v39, %v622_v40 }
 0x50a   :  { %102 = vperm.xlu0 %2708, %v51_v9   ;;  %640 = vrot.lane.b32.xlu1 %v3115_v41, %s2886_s28 }
 0x50e   :  { %112 = vperm.xlu0 %2708, %v53_v17   ;;  %107 = vperm.xlu1 %2709, %v52_v24  }
 0x574   :  { %v637_v42 = vpop.permute.xlu1 %636 }
 0x575   :  { %2449 = vmatmul.mubr.msk.f32.vlgmr.msra.gmra.mrb[6].mxu0 %vm290_vm2, %v637_v42 }
 0x576   :  { %2451 = vmatprep.mubr.msk.f32.mxu0 %vm2882_vm0, %v2883_v6  ;;  %2652 = vmatpush3.bf16.msra.mxu0 %v2968_v4 }
 0x577   :  { %2653 = vmatprep.subr.bf16.mxu0 %v2881_v3 }
 0x578   :  { %v639_v43 = vpop.permute.xlu0 %638 }
 0x579   :  { %2452 = vmatmul.mubr.msk.f32.gmra.mrb[8].mxu0 %vm290_vm2, %v639_v43 }
 0x57a   :  { %2454 = vmatprep.mubr.msk.f32.mxu0 %vm2882_vm0, %v2883_v6  ;;  %2655 = vmatpush3.bf16.msra.mxu0 %v2982_v10 }
 0x57b   :  { %2662 = vmatprep.subr.bf16.mxu0 %v2881_v3 }
 0x57c   :  { %v641_v44 = vpop.permute.xlu1 %640 }
 0x57d   :  { %2455 = vmatmul.mubr.msk.f32.gmra.mrb[10].mxu0 %vm290_vm2, %v641_v44 }
 0x57e   :  { %2482 = vmatprep.mubr.msk.f32.mxu0 %vm2882_vm0, %v2883_v6 }
 0x589   :  { %v103_v45 = vpop.permute.xlu0 %102 }
 0x58a   :  { %v202_v46 = vmul.f32 %v3013_v12, %v103_v45 }
 0x58c   :  { %v233_v47 = vadd.f32 %v3018_v13, %v202_v46 }
 0x58d   :  { %v108_v48 = vpop.permute.xlu1 %107  ;;  %v113_v49 = vpop.permute.xlu0 %112 }
 0x58e   :  { %258 = vst.msk [vmem:[#allocation2 + $0x30] sm:$0xff] %vm251_vm1, %v233_v47  ;;  %v203_v50 = vmul.f32 %v3013_v12, %v108_v48  ;;  %v204_v51 = vmul.f32 %v3013_v12, %v113_v49 }
 0x590   :  { %v234_v52 = vadd.f32 %v3018_v13, %v203_v50  ;;  %v235_v53 = vadd.f32 %v3018_v13, %v204_v51 }
 0x592   :  { %259 = vst.msk [vmem:[#allocation2 + $0x38] sm:$0xff] %vm251_vm1, %v234_v52  ;;  %260 = vst.msk [vmem:[#allocation2 + $0x40] sm:$0xff] %vm251_vm1, %v235_v53 }
 0x595   :  { %v630_v63 = vld [vmem:[#allocation2 + $0x30] sm:$0xff] }
 0x599   :  { %v631_v1 = vld [vmem:[#allocation2 + $0x38] sm:$0xff]  ;;  %v632_v7 = vld [vmem:[#allocation2 + $0x40] sm:$0xff] }
 0x648   :  { %v714_v54 = vpop.f32.mrb[6].mxu0 }
 0x649   :  { %v715_v55 = vadd.f32 %v3032_v23, %v714_v54  ;;  %v2450_v56 = vpop.f32.mrb[7].mxu0 }
 0x64b   :  { %752 = vrot.lane.b32.xlu1 %v715_v55, %s2885_s27  ;;  %v728_v0 = vadd.f32 %v715_v55, %v630_v63 }
 0x64c   :  { %v719_v57 = vpop.f32.mrb[8].mxu0 }
 0x64d   :  { %v720_v58 = vadd.f32 %v3032_v23, %v719_v57  ;;  %v2453_v59 = vpop.f32.mrb[9].mxu0  ;;  %v2265_v2 = vmul.f32 -1.442695, %v728_v0 }
 0x64f   :  { %754 = vrot.lane.b32.xlu0 %v720_v58, %s2885_s27  ;;  %v729_v5 = vadd.f32 %v720_v58, %v631_v1  ;;  %2746 = vpow2.f32 %v2265_v2 }
 0x650   :  { %v724_v60 = vpop.f32.mrb[10].mxu0 }
 0x651   :  { %v725_v61 = vadd.f32 %v3032_v23, %v724_v60  ;;  %v2456_v62 = vpop.f32.mrb[11].mxu0  ;;  %v2266_v8 = vmul.f32 -1.442695, %v729_v5 }
 0x653   :  { %756 = vrot.lane.b32.xlu1 %v725_v61, %s2885_s27  ;;  %v730_v11 = vadd.f32 %v725_v61, %v632_v7  ;;  %2748 = vpow2.f32 %v2266_v8 }
 0x655   :  { %v2267_v14 = vmul.f32 -1.442695, %v730_v11 }
 0x657   :  { %2750 = vpow2.f32 %v2267_v14 }
 0x659   :  { %v2747_v15 = vpop.eup %2746 }
 0x65a   :  { %v740_v16 = vadd.f32 1.0, %v2747_v15 }
 0x65c   :  { %2752 = vrcp.f32 %v740_v16 }
 0x65d   :  { %v2749_v18 = vpop.eup %2748 }
 0x65e   :  { %v741_v19 = vadd.f32 1.0, %v2749_v18 }
 0x660   :  { %2754 = vrcp.f32 %v741_v19 }
 0x661   :  { %v2751_v20 = vpop.eup %2750 }
 0x662   :  { %v742_v21 = vadd.f32 1.0, %v2751_v20 }
 0x664   :  { %2756 = vrcp.f32 %v742_v21 }
 0x666   :  { %v2753_v22 = vpop.eup %2752 }
 0x667   :  { %v782_v42 = vsub.f32 1.0, %v2753_v22  ;;  %v800_v44 = vmul.f32 %v2753_v22, %v3102_v31  ;;  %v54_v31 = vld [vmem:[%s3579_s0 + $0x48] sm:$0xff] }
 0x66a   :  { %v2755_v27 = vpop.eup %2754 }
 0x66b   :  { %v783_v47 = vsub.f32 1.0, %v2755_v27  ;;  %v801_v49 = vmul.f32 %v2755_v27, %v3107_v36  ;;  %v55_v36 = vld [vmem:[%s3579_s0 + $0x50] sm:$0xff] }
 0x66e   :  { %v2757_v30 = vpop.eup %2756 }
 0x66f   :  { %v784_v52 = vsub.f32 1.0, %v2757_v30  ;;  %v802_v54 = vmul.f32 %v2757_v30, %v3115_v41  ;;  %v56_v41 = vld [vmem:[%s3579_s0 + $0x58] sm:$0xff] }
 0x6bd   :  { %v753_v25 = vpop.permute.xlu1 %752 }
 0x6be   :  { %v761_v26 = vmul.f32 %v2753_v22, %v753_v25 }
 0x6c0   :  { %767 = vrot.lane.b32.xlu0 %v761_v26, %s2885_s27 }
 0x6c1   :  { %v755_v28 = vpop.permute.xlu0 %754 }
 0x6c2   :  { %v762_v29 = vmul.f32 %v2755_v27, %v755_v28 }
 0x6c4   :  { %769 = vrot.lane.b32.xlu1 %v762_v29, %s2885_s27 }
 0x6c5   :  { %v757_v32 = vpop.permute.xlu1 %756 }
 0x6c6   :  { %v763_v33 = vmul.f32 %v2757_v30, %v757_v32 }
 0x6c8   :  { %771 = vrot.lane.b32.xlu0 %v763_v33, %s2885_s27 }
 0x732   :  { %v768_v34 = vpop.permute.xlu0 %767 }
 0x733   :  { %v776_v35 = vadd.f32 %v768_v34, %v630_v63 }
 0x735   :  { %2758 = vtanh.f32 %v776_v35 }
 0x736   :  { %v770_v37 = vpop.permute.xlu1 %769 }
 0x737   :  { %v777_v38 = vadd.f32 %v770_v37, %v631_v1 }
 0x739   :  { %2760 = vtanh.f32 %v777_v38 }
 0x73a   :  { %v772_v39 = vpop.permute.xlu0 %771 }
 0x73b   :  { %v778_v40 = vadd.f32 %v772_v39, %v632_v7 }
 0x73d   :  { %2762 = vtanh.f32 %v778_v40 }
 0x73f   :  { %v2759_v9 = vpop.eup %2758 }
 0x740   :  { %788 = vrot.lane.b32.xlu1 %v2759_v9, %s2886_s28 }
 0x743   :  { %v2761_v17 = vpop.eup %2760 }
 0x744   :  { %790 = vrot.lane.b32.xlu0 %v2761_v17, %s2886_s28 }
 0x747   :  { %v2763_v24 = vpop.eup %2762 }
 0x748   :  { %792 = vrot.lane.b32.xlu1 %v2763_v24, %s2886_s28 }
 0x7b2   :  { %v789_v43 = vpop.permute.xlu1 %788 }
 0x7b3   :  { %v797_v45 = vmul.f32 %v789_v43, %v782_v42 }
 0x7b5   :  { %v3160_v46 = vadd.f32 %v800_v44, %v797_v45 }
 0x7b6   :  { %v791_v48 = vpop.permute.xlu0 %790 }
 0x7b7   :  { %v798_v50 = vmul.f32 %v791_v48, %v783_v47  ;;  %813 = vrot.lane.b32.xlu0 %v3160_v46, %s2886_s28 }
 0x7b9   :  { %v3165_v51 = vadd.f32 %v801_v49, %v798_v50 }
 0x7ba   :  { %v793_v53 = vpop.permute.xlu1 %792 }
 0x7bb   :  { %v799_v55 = vmul.f32 %v793_v53, %v784_v52  ;;  %815 = vrot.lane.b32.xlu1 %v3165_v51, %s2886_s28 }
 0x7bd   :  { %v3173_v56 = vadd.f32 %v802_v54, %v799_v55 }
 0x7bf   :  { %817 = vrot.lane.b32.xlu0 %v3173_v56, %s2886_s28  ;;  %117 = vperm.xlu1 %2709, %v54_v31  }
 0x7c3   :  { %122 = vperm.xlu0 %2708, %v55_v36   ;;  %127 = vperm.xlu1 %2709, %v56_v41  }
 0x829   :  { %v814_v57 = vpop.permute.xlu0 %813 }
 0x82a   :  { %2466 = vmatmul.mubr.msk.f32.vlgmr.msra.gmra.mrb[6].mxu1 %vm290_vm2, %v814_v57 }
 0x82b   :  { %2468 = vmatprep.mubr.msk.f32.mxu1 %vm2882_vm0, %v2883_v6  ;;  %2658 = vmatpush3.bf16.msra.mxu1 %v2968_v4 }
 0x82c   :  { %2659 = vmatprep.subr.bf16.mxu1 %v2881_v3 }
 0x82d   :  { %v816_v58 = vpop.permute.xlu1 %815 }
 0x82e   :  { %2469 = vmatmul.mubr.msk.f32.gmra.mrb[8].mxu1 %vm290_vm2, %v816_v58 }
 0x82f   :  { %2471 = vmatprep.mubr.msk.f32.mxu1 %vm2882_vm0, %v2883_v6  ;;  %2661 = vmatpush3.bf16.msra.mxu1 %v2982_v10 }
 0x830   :  { %2668 = vmatprep.subr.bf16.mxu1 %v2881_v3 }
 0x831   :  { %v818_v59 = vpop.permute.xlu0 %817 }
 0x832   :  { %2472 = vmatmul.mubr.msk.f32.gmra.mrb[10].mxu1 %vm290_vm2, %v818_v59 }
 0x833   :  { %2499 = vmatprep.mubr.msk.f32.mxu1 %vm2882_vm0, %v2883_v6 }
 0x83e   :  { %v118_v60 = vpop.permute.xlu1 %117 }
 0x83f   :  { %v205_v61 = vmul.f32 %v3013_v12, %v118_v60 }
 0x841   :  { %v236_v62 = vadd.f32 %v3018_v13, %v205_v61 }
 0x842   :  { %v128_v63 = vpop.permute.xlu1 %127  ;;  %v123_v0 = vpop.permute.xlu0 %122 }
 0x843   :  { %261 = vst.msk [vmem:[#allocation2 + $0x48] sm:$0xff] %vm251_vm1, %v236_v62  ;;  %v207_v1 = vmul.f32 %v3013_v12, %v128_v63  ;;  %v206_v2 = vmul.f32 %v3013_v12, %v123_v0 }
 0x845   :  { %v238_v5 = vadd.f32 %v3018_v13, %v207_v1  ;;  %v237_v7 = vadd.f32 %v3018_v13, %v206_v2 }
 0x847   :  { %263 = vst.msk [vmem:[#allocation2 + $0x58] sm:$0xff] %vm251_vm1, %v238_v5  ;;  %262 = vst.msk [vmem:[#allocation2 + $0x50] sm:$0xff] %vm251_vm1, %v237_v7 }
 0x84a   :  { %v807_v22 = vld [vmem:[#allocation2 + $0x48] sm:$0xff] }
 0x84e   :  { %v808_v26 = vld [vmem:[#allocation2 + $0x50] sm:$0xff]  ;;  %v809_v29 = vld [vmem:[#allocation2 + $0x58] sm:$0xff] }
 0x8fd   :  { %v891_v8 = vpop.f32.mrb[6].mxu1 }
 0x8fe   :  { %v892_v11 = vadd.f32 %v3032_v23, %v891_v8  ;;  %v2467_v14 = vpop.f32.mrb[7].mxu1 }
 0x900   :  { %929 = vrot.lane.b32.xlu0 %v892_v11, %s2885_s27  ;;  %v905_v25 = vadd.f32 %v892_v11, %v807_v22 }
 0x901   :  { %v896_v15 = vpop.f32.mrb[8].mxu1 }
 0x902   :  { %v897_v16 = vadd.f32 %v3032_v23, %v896_v15  ;;  %v2470_v18 = vpop.f32.mrb[9].mxu1  ;;  %v2271_v27 = vmul.f32 -1.442695, %v905_v25 }
 0x904   :  { %931 = vrot.lane.b32.xlu1 %v897_v16, %s2885_s27  ;;  %v906_v28 = vadd.f32 %v897_v16, %v808_v26  ;;  %2764 = vpow2.f32 %v2271_v27 }
 0x905   :  { %v901_v19 = vpop.f32.mrb[10].mxu1 }
 0x906   :  { %v902_v20 = vadd.f32 %v3032_v23, %v901_v19  ;;  %v2473_v21 = vpop.f32.mrb[11].mxu1  ;;  %v2272_v30 = vmul.f32 -1.442695, %v906_v28 }
 0x908   :  { %933 = vrot.lane.b32.xlu0 %v902_v20, %s2885_s27  ;;  %v907_v32 = vadd.f32 %v902_v20, %v809_v29  ;;  %2766 = vpow2.f32 %v2272_v30 }
 0x90a   :  { %v2273_v33 = vmul.f32 -1.442695, %v907_v32 }
 0x90c   :  { %2768 = vpow2.f32 %v2273_v33 }
 0x90e   :  { %v2765_v34 = vpop.eup %2764 }
 0x90f   :  { %v917_v35 = vadd.f32 1.0, %v2765_v34 }
 0x911   :  { %2770 = vrcp.f32 %v917_v35 }
 0x912   :  { %v2767_v37 = vpop.eup %2766 }
 0x913   :  { %v918_v38 = vadd.f32 1.0, %v2767_v37 }
 0x915   :  { %2772 = vrcp.f32 %v918_v38 }
 0x916   :  { %v2769_v39 = vpop.eup %2768 }
 0x917   :  { %v919_v40 = vadd.f32 1.0, %v2769_v39 }
 0x919   :  { %2774 = vrcp.f32 %v919_v40 }
 0x91b   :  { %v2771_v9 = vpop.eup %2770 }
 0x91c   :  { %v959_v57 = vsub.f32 1.0, %v2771_v9  ;;  %v977_v59 = vmul.f32 %v2771_v9, %v3160_v46  ;;  %v57_v46 = vld [vmem:[%s3579_s0 + $0x60] sm:$0xff] }
 0x91f   :  { %v2773_v42 = vpop.eup %2772 }
 0x920   :  { %v960_v62 = vsub.f32 1.0, %v2773_v42  ;;  %v978_v0 = vmul.f32 %v2773_v42, %v3165_v51  ;;  %v59_v51 = vld [vmem:[%s3579_s0 + $0x70] sm:$0xff] }
 0x923   :  { %v2775_v45 = vpop.eup %2774 }
 0x924   :  { %v961_v5 = vsub.f32 1.0, %v2775_v45  ;;  %v979_v8 = vmul.f32 %v2775_v45, %v3173_v56  ;;  %v58_v56 = vld [vmem:[%s3579_s0 + $0x68] sm:$0xff] }
 0x972   :  { %v930_v17 = vpop.permute.xlu0 %929 }
 0x973   :  { %v938_v24 = vmul.f32 %v2771_v9, %v930_v17 }
 0x975   :  { %944 = vrot.lane.b32.xlu1 %v938_v24, %s2885_s27 }
 0x976   :  { %v932_v43 = vpop.permute.xlu1 %931 }
 0x977   :  { %v939_v44 = vmul.f32 %v2773_v42, %v932_v43 }
 0x979   :  { %946 = vrot.lane.b32.xlu0 %v939_v44, %s2885_s27 }
 0x97a   :  { %v934_v47 = vpop.permute.xlu0 %933 }
 0x97b   :  { %v940_v48 = vmul.f32 %v2775_v45, %v934_v47 }
 0x97d   :  { %948 = vrot.lane.b32.xlu1 %v940_v48, %s2885_s27 }
 0x9e7   :  { %v945_v49 = vpop.permute.xlu1 %944 }
 0x9e8   :  { %v953_v50 = vadd.f32 %v945_v49, %v807_v22 }
 0x9ea   :  { %2776 = vtanh.f32 %v953_v50 }
 0x9eb   :  { %v947_v52 = vpop.permute.xlu0 %946 }
 0x9ec   :  { %v954_v53 = vadd.f32 %v947_v52, %v808_v26 }
 0x9ee   :  { %2778 = vtanh.f32 %v954_v53 }
 0x9ef   :  { %v949_v54 = vpop.permute.xlu1 %948 }
 0x9f0   :  { %v955_v55 = vadd.f32 %v949_v54, %v809_v29 }
 0x9f2   :  { %2780 = vtanh.f32 %v955_v55 }
 0x9f4   :  { %v2777_v31 = vpop.eup %2776 }
 0x9f5   :  { %965 = vrot.lane.b32.xlu0 %v2777_v31, %s2886_s28 }
 0x9f8   :  { %v2779_v36 = vpop.eup %2778 }
 0x9f9   :  { %967 = vrot.lane.b32.xlu1 %v2779_v36, %s2886_s28 }
 0x9fc   :  { %v2781_v41 = vpop.eup %2780 }
 0x9fd   :  { %969 = vrot.lane.b32.xlu0 %v2781_v41, %s2886_s28 }
 0xa67   :  { %v966_v58 = vpop.permute.xlu0 %965 }
 0xa68   :  { %v974_v60 = vmul.f32 %v966_v58, %v959_v57 }
 0xa6a   :  { %v3218_v61 = vadd.f32 %v977_v59, %v974_v60 }
 0xa6b   :  { %v968_v63 = vpop.permute.xlu1 %967 }
 0xa6c   :  { %v975_v1 = vmul.f32 %v968_v63, %v960_v62  ;;  %990 = vrot.lane.b32.xlu1 %v3218_v61, %s2886_s28 }
 0xa6e   :  { %v3223_v2 = vadd.f32 %v978_v0, %v975_v1 }
 0xa6f   :  { %v970_v7 = vpop.permute.xlu0 %969 }
 0xa70   :  { %v976_v11 = vmul.f32 %v970_v7, %v961_v5  ;;  %992 = vrot.lane.b32.xlu0 %v3223_v2, %s2886_s28 }
 0xa72   :  { %v3231_v14 = vadd.f32 %v979_v8, %v976_v11 }
 0xa74   :  { %132 = vperm.xlu0 %2708, %v57_v46   ;;  %994 = vrot.lane.b32.xlu1 %v3231_v14, %s2886_s28 }
 0xa78   :  { %142 = vperm.xlu0 %2708, %v59_v51   ;;  %137 = vperm.xlu1 %2709, %v58_v56  }
 0xade   :  { %v991_v15 = vpop.permute.xlu1 %990 }
 0xadf   :  { %2483 = vmatmul.mubr.msk.f32.vlgmr.msra.gmra.mrb[12].mxu0 %vm290_vm2, %v991_v15 }
 0xae0   :  { %2485 = vmatprep.mubr.msk.f32.mxu0 %vm2882_vm0, %v2883_v6  ;;  %2664 = vmatpush3.bf16.msra.mxu0 %v2968_v4 }
 0xae1   :  { %2665 = vmatprep.subr.bf16.mxu0 %v2881_v3 }
 0xae2   :  { %v993_v16 = vpop.permute.xlu0 %992 }
 0xae3   :  { %2486 = vmatmul.mubr.msk.f32.gmra.mrb[14].mxu0 %vm290_vm2, %v993_v16 }
 0xae4   :  { %2488 = vmatprep.mubr.msk.f32.mxu0 %vm2882_vm0, %v2883_v6  ;;  %2667 = vmatpush3.bf16.msra.mxu0 %v2982_v10 }
 0xae5   :  { %2674 = vmatprep.subr.bf16.mxu0 %v2881_v3 }
 0xae6   :  { %v995_v18 = vpop.permute.xlu1 %994 }
 0xae7   :  { %2489 = vmatmul.mubr.msk.f32.gmra.mrb[16].mxu0 %vm290_vm2, %v995_v18 }
 0xae8   :  { %2516 = vmatprep.mubr.msk.f32.mxu0 %vm2882_vm0, %v2883_v6 }
 0xaf3   :  { %v133_v19 = vpop.permute.xlu0 %132 }
 0xaf4   :  { %v208_v20 = vmul.f32 %v3013_v12, %v133_v19 }
 0xaf6   :  { %v239_v21 = vadd.f32 %v3018_v13, %v208_v20 }
 0xaf7   :  { %v138_v22 = vpop.permute.xlu1 %137  ;;  %v143_v25 = vpop.permute.xlu0 %142 }
 0xaf8   :  { %264 = vst.msk [vmem:[#allocation2 + $0x60] sm:$0xff] %vm251_vm1, %v239_v21  ;;  %v209_v26 = vmul.f32 %v3013_v12, %v138_v22  ;;  %v210_v27 = vmul.f32 %v3013_v12, %v143_v25 }
 0xafa   :  { %v240_v28 = vadd.f32 %v3018_v13, %v209_v26  ;;  %v241_v29 = vadd.f32 %v3018_v13, %v210_v27 }
 0xafc   :  { %265 = vst.msk [vmem:[#allocation2 + $0x68] sm:$0xff] %vm251_vm1, %v240_v28  ;;  %266 = vst.msk [vmem:[#allocation2 + $0x70] sm:$0xff] %vm251_vm1, %v241_v29 }
 0xaff   :  { %v984_v39 = vld [vmem:[#allocation2 + $0x60] sm:$0xff] }
 0xb03   :  { %v985_v9 = vld [vmem:[#allocation2 + $0x68] sm:$0xff]  ;;  %v986_v42 = vld [vmem:[#allocation2 + $0x70] sm:$0xff] }
 0xbb2   :  { %v1068_v30 = vpop.f32.mrb[12].mxu0 }
 0xbb3   :  { %v1069_v32 = vadd.f32 %v3032_v23, %v1068_v30  ;;  %v2484_v33 = vpop.f32.mrb[13].mxu0 }
 0xbb5   :  { %1106 = vrot.lane.b32.xlu1 %v1069_v32, %s2885_s27  ;;  %v1082_v40 = vadd.f32 %v1069_v32, %v984_v39 }
 0xbb6   :  { %v1073_v34 = vpop.f32.mrb[14].mxu0 }
 0xbb7   :  { %v1074_v35 = vadd.f32 %v3032_v23, %v1073_v34  ;;  %v2487_v37 = vpop.f32.mrb[15].mxu0  ;;  %v2277_v17 = vmul.f32 -1.442695, %v1082_v40 }
 0xbb9   :  { %1108 = vrot.lane.b32.xlu0 %v1074_v35, %s2885_s27  ;;  %v1083_v24 = vadd.f32 %v1074_v35, %v985_v9  ;;  %2782 = vpow2.f32 %v2277_v17 }
 0xbba   :  { %v1078_v12 = vpop.f32.mrb[16].mxu0 }
 0xbbb   :  { %v1079_v38 = vadd.f32 %v3032_v23, %v1078_v12  ;;  %v2490_v13 = vpop.f32.mrb[17].mxu0  ;;  %v2278_v43 = vmul.f32 -1.442695, %v1083_v24  ;;  %v3334_v24 = vld [vmem:[%s3583_s4] ss:$0 sm:$0xff] }
 0xbbd   :  { %1110 = vrot.lane.b32.xlu1 %v1079_v38, %s2885_s27  ;;  %v1084_v44 = vadd.f32 %v1079_v38, %v986_v42  ;;  %2784 = vpow2.f32 %v2278_v43 }
 0xbbf   :  { %v2279_v45 = vmul.f32 -1.442695, %v1084_v44 }
 0xbc1   :  { %2786 = vpow2.f32 %v2279_v45 }
 0xbc3   :  { %v2783_v47 = vpop.eup %2782 }
 0xbc4   :  { %v1094_v48 = vadd.f32 1.0, %v2783_v47 }
 0xbc6   :  { %2788 = vrcp.f32 %v1094_v48 }
 0xbc7   :  { %v2785_v49 = vpop.eup %2784 }
 0xbc8   :  { %v1095_v23 = vadd.f32 1.0, %v2785_v49 }
 0xbca   :  { %2790 = vrcp.f32 %v1095_v23 }
 0xbcb   :  { %v2787_v50 = vpop.eup %2786 }
 0xbcc   :  { %v1096_v52 = vadd.f32 1.0, %v2787_v50 }
 0xbce   :  { %2792 = vrcp.f32 %v1096_v52 }
 0xbd0   :  { %v2789_v53 = vpop.eup %2788 }
 0xbd1   :  { %v1136_v46 = vsub.f32 1.0, %v2789_v53  ;;  %v1154_v56 = vmul.f32 %v2789_v53, %v3218_v61  ;;  %v60_v61 = vld [vmem:[%s3579_s0 + $0x78] sm:$0xff] }
 0xbd4   :  { %v2791_v31 = vpop.eup %2790 }
 0xbd5   :  { %v1137_v18 = vsub.f32 1.0, %v2791_v31  ;;  %v1155_v20 = vmul.f32 %v2791_v31, %v3223_v2  ;;  %v61_v2 = vld [vmem:[%s3579_s0 + $0x80] sm:$0xff] }
 0xbd8   :  { %v2793_v57 = vpop.eup %2792 }
 0xbd9   :  { %v1138_v25 = vsub.f32 1.0, %v2793_v57  ;;  %v1156_v27 = vmul.f32 %v2793_v57, %v3231_v14  ;;  %v62_v14 = vld [vmem:[%s3579_s0 + $0x88] sm:$0xff] }
 0xc27   :  { %v1107_v54 = vpop.permute.xlu1 %1106 }
 0xc28   :  { %v1115_v55 = vmul.f32 %v2789_v53, %v1107_v54 }
 0xc2a   :  { %1121 = vrot.lane.b32.xlu0 %v1115_v55, %s2885_s27 }
 0xc2b   :  { %v1109_v36 = vpop.permute.xlu0 %1108 }
 0xc2c   :  { %v1116_v41 = vmul.f32 %v2791_v31, %v1109_v36 }
 0xc2e   :  { %1123 = vrot.lane.b32.xlu1 %v1116_v41, %s2885_s27 }
 0xc2f   :  { %v1111_v58 = vpop.permute.xlu1 %1110 }
 0xc30   :  { %v1117_v59 = vmul.f32 %v2793_v57, %v1111_v58 }
 0xc32   :  { %1125 = vrot.lane.b32.xlu0 %v1117_v59, %s2885_s27 }
 0xc9c   :  { %v1122_v60 = vpop.permute.xlu0 %1121 }
 0xc9d   :  { %v1130_v62 = vadd.f32 %v1122_v60, %v984_v39 }
 0xc9f   :  { %2794 = vtanh.f32 %v1130_v62 }
 0xca0   :  { %v1124_v63 = vpop.permute.xlu1 %1123 }
 0xca1   :  { %v1131_v0 = vadd.f32 %v1124_v63, %v985_v9 }
 0xca3   :  { %2796 = vtanh.f32 %v1131_v0 }
 0xca4   :  { %v1126_v1 = vpop.permute.xlu0 %1125 }
 0xca5   :  { %v1132_v5 = vadd.f32 %v1126_v1, %v986_v42 }
 0xca7   :  { %2798 = vtanh.f32 %v1132_v5 }
 0xca9   :  { %v2795_v7 = vpop.eup %2794 }
 0xcaa   :  { %1142 = vrot.lane.b32.xlu1 %v2795_v7, %s2886_s28 }
 0xcad   :  { %v2797_v8 = vpop.eup %2796 }
 0xcae   :  { %1144 = vrot.lane.b32.xlu0 %v2797_v8, %s2886_s28 }
 0xcb1   :  { %v2799_v11 = vpop.eup %2798 }
 0xcb2   :  { %1146 = vrot.lane.b32.xlu1 %v2799_v11, %s2886_s28 }
 0xd1c   :  { %v1143_v51 = vpop.permute.xlu1 %1142 }
 0xd1d   :  { %v1151_v15 = vmul.f32 %v1143_v51, %v1136_v46 }
 0xd1f   :  { %v3276_v16 = vadd.f32 %v1154_v56, %v1151_v15 }
 0xd20   :  { %v1145_v19 = vpop.permute.xlu0 %1144 }
 0xd21   :  { %v1152_v21 = vmul.f32 %v1145_v19, %v1137_v18  ;;  %1167 = vrot.lane.b32.xlu0 %v3276_v16, %s2886_s28 }
 0xd23   :  { %v3281_v22 = vadd.f32 %v1155_v20, %v1152_v21 }
 0xd24   :  { %v1147_v26 = vpop.permute.xlu1 %1146 }
 0xd25   :  { %v1153_v28 = vmul.f32 %v1147_v26, %v1138_v25  ;;  %1169 = vrot.lane.b32.xlu1 %v3281_v22, %s2886_s28 }
 0xd27   :  { %v3289_v29 = vadd.f32 %v1156_v27, %v1153_v28 }
 0xd29   :  { %1171 = vrot.lane.b32.xlu0 %v3289_v29, %s2886_s28  ;;  %147 = vperm.xlu1 %2709, %v60_v61  }
 0xd2d   :  { %152 = vperm.xlu0 %2708, %v61_v2   ;;  %157 = vperm.xlu1 %2709, %v62_v14  }
 0xd93   :  { %v1168_v30 = vpop.permute.xlu0 %1167 }
 0xd94   :  { %2500 = vmatmul.mubr.msk.f32.vlgmr.msra.gmra.mrb[12].mxu1 %vm290_vm2, %v1168_v30 }
 0xd95   :  { %2502 = vmatprep.mubr.msk.f32.mxu1 %vm2882_vm0, %v2883_v6  ;;  %2670 = vmatpush3.bf16.msra.mxu1 %v2968_v4  ;;  %v3315_v4 = vld [vmem:[%s3580_s1] ss:$0 sm:$0xff] }
 0xd96   :  { %2671 = vmatprep.subr.bf16.mxu1 %v2881_v3 }
 0xd97   :  { %v1170_v32 = vpop.permute.xlu1 %1169 }
 0xd98   :  { %2503 = vmatmul.mubr.msk.f32.gmra.mrb[14].mxu1 %vm290_vm2, %v1170_v32 }
 0xd99   :  { %2505 = vmatprep.mubr.msk.f32.mxu1 %vm2882_vm0, %v2883_v6  ;;  %2673 = vmatpush3.bf16.msra.mxu1 %v2982_v10  ;;  %v3321_v10 = vld [vmem:[%s3581_s2] ss:$0 sm:$0xff]  ;;  %s2887_s2 = smov [#allocation3]  }
 0xd9a   :  { %2680 = vmatprep.subr.bf16.mxu1 %v2881_v3  ;;  %s2242_s4 = sshll.u32 %s2887_s2, 4  ;;  %s2243_s4 = int_to_ptr.vmem [resolvable:$true] %s2242_s4 }
 0xd9b   :  { %v1172_v33 = vpop.permute.xlu0 %1171  ;;  %p2862_p1 = scmp.lt.s32.totalorder %s2243_s4, %s2243_s4 }
 0xd9c   :  { %2506 = vmatmul.mubr.msk.f32.gmra.mrb[16].mxu1 %vm290_vm2, %v1172_v33 }
 0xd9d   :  { %2533 = vmatprep.mubr.msk.f32.mxu1 %vm2882_vm0, %v2883_v6 }
 0xda8   :  { %v148_v34 = vpop.permute.xlu1 %147 }
 0xda9   :  { %v211_v35 = vmul.f32 %v3315_v4, %v148_v34 }
 0xdab   :  { %v242_v37 = vadd.f32 %v3321_v10, %v211_v35 }
 0xdac   :  { %v158_v12 = vpop.permute.xlu1 %157  ;;  %v153_v38 = vpop.permute.xlu0 %152 }
 0xdad   :  { %267 = vst.msk [vmem:[#allocation2 + $0x78] sm:$0xff] %vm251_vm1, %v242_v37  ;;  %v213_v13 = vmul.f32 %v3315_v4, %v158_v12  ;;  %v212_v39 = vmul.f32 %v3315_v4, %v153_v38 }
 0xdaf   :  { %v244_v40 = vadd.f32 %v3321_v10, %v213_v13  ;;  %v243_v9 = vadd.f32 %v3321_v10, %v212_v39 }
 0xdb1   :  { %269 = vst.msk [vmem:[#allocation2 + $0x88] sm:$0xff] %vm251_vm1, %v244_v40  ;;  %268 = vst.msk [vmem:[#allocation2 + $0x80] sm:$0xff] %vm251_vm1, %v243_v9 }
 0xdb4   :  { %v1161_v50 = vld [vmem:[#allocation2 + $0x78] sm:$0xff] }
 0xdb8   :  { %v1162_v53 = vld [vmem:[#allocation2 + $0x80] sm:$0xff]  ;;  %v1163_v31 = vld [vmem:[#allocation2 + $0x88] sm:$0xff] }
 0xe67   :  { %v1245_v17 = vpop.f32.mrb[12].mxu1 }
 0xe68   :  { %v1246_v42 = vadd.f32 %v3334_v24, %v1245_v17  ;;  %v2501_v43 = vpop.f32.mrb[13].mxu1 }
 0xe6a   :  { %1283 = vrot.lane.b32.xlu0 %v1246_v42, %s2885_s27  ;;  %v1259_v52 = vadd.f32 %v1246_v42, %v1161_v50 }
 0xe6b   :  { %v1250_v44 = vpop.f32.mrb[14].mxu1 }
 0xe6c   :  { %v1251_v45 = vadd.f32 %v3334_v24, %v1250_v44  ;;  %v2504_v47 = vpop.f32.mrb[15].mxu1  ;;  %v2283_v54 = vmul.f32 -1.442695, %v1259_v52 }
 0xe6e   :  { %1285 = vrot.lane.b32.xlu1 %v1251_v45, %s2885_s27  ;;  %v1260_v55 = vadd.f32 %v1251_v45, %v1162_v53  ;;  %2800 = vpow2.f32 %v2283_v54 }
 0xe6f   :  { %v1255_v48 = vpop.f32.mrb[16].mxu1 }
 0xe70   :  { %v1256_v49 = vadd.f32 %v3334_v24, %v1255_v48  ;;  %v2507_v23 = vpop.f32.mrb[17].mxu1  ;;  %v2284_v36 = vmul.f32 -1.442695, %v1260_v55 }
 0xe72   :  { %1287 = vrot.lane.b32.xlu0 %v1256_v49, %s2885_s27  ;;  %v1261_v41 = vadd.f32 %v1256_v49, %v1163_v31  ;;  %2802 = vpow2.f32 %v2284_v36 }
 0xe74   :  { %v2285_v57 = vmul.f32 -1.442695, %v1261_v41 }
 0xe76   :  { %2804 = vpow2.f32 %v2285_v57 }
 0xe78   :  { %v2801_v58 = vpop.eup %2800 }
 0xe79   :  { %v1271_v59 = vadd.f32 1.0, %v2801_v58 }
 0xe7b   :  { %2806 = vrcp.f32 %v1271_v59 }
 0xe7c   :  { %v2803_v60 = vpop.eup %2802 }
 0xe7d   :  { %v1272_v62 = vadd.f32 1.0, %v2803_v60 }
 0xe7f   :  { %2808 = vrcp.f32 %v1272_v62 }
 0xe80   :  { %v2805_v63 = vpop.eup %2804 }
 0xe81   :  { %v1273_v0 = vadd.f32 1.0, %v2805_v63 }
 0xe83   :  { %2810 = vrcp.f32 %v1273_v0 }
 0xe85   :  { %v2807_v1 = vpop.eup %2806 }
 0xe86   :  { %v1313_v2 = vsub.f32 1.0, %v2807_v1  ;;  %v1331_v30 = vmul.f32 %v2807_v1, %v3276_v16  ;;  %v63_v16 = vld [vmem:[%s3579_s0 + $0x90] sm:$0xff] }
 0xe89   :  { %v2809_v8 = vpop.eup %2808 }
 0xe8a   :  { %v1314_v34 = vsub.f32 1.0, %v2809_v8  ;;  %v1332_v37 = vmul.f32 %v2809_v8, %v3281_v22  ;;  %v65_v22 = vld [vmem:[%s3579_s0 + $0xa0] sm:$0xff] }
 0xe8d   :  { %v2811_v51 = vpop.eup %2810 }
 0xe8e   :  { %v1315_v13 = vsub.f32 1.0, %v2811_v51  ;;  %v1333_v40 = vmul.f32 %v2811_v51, %v3289_v29  ;;  %v64_v29 = vld [vmem:[%s3579_s0 + $0x98] sm:$0xff] }
 0xedc   :  { %v1284_v5 = vpop.permute.xlu0 %1283 }
 0xedd   :  { %v1292_v7 = vmul.f32 %v2807_v1, %v1284_v5 }
 0xedf   :  { %1298 = vrot.lane.b32.xlu1 %v1292_v7, %s2885_s27 }
 0xee0   :  { %v1286_v11 = vpop.permute.xlu1 %1285 }
 0xee1   :  { %v1293_v46 = vmul.f32 %v2809_v8, %v1286_v11 }
 0xee3   :  { %1300 = vrot.lane.b32.xlu0 %v1293_v46, %s2885_s27 }
 0xee4   :  { %v1288_v56 = vpop.permute.xlu0 %1287 }
 0xee5   :  { %v1294_v15 = vmul.f32 %v2811_v51, %v1288_v56 }
 0xee7   :  { %1302 = vrot.lane.b32.xlu1 %v1294_v15, %s2885_s27 }
 0xf51   :  { %v1299_v18 = vpop.permute.xlu1 %1298 }
 0xf52   :  { %v1307_v19 = vadd.f32 %v1299_v18, %v1161_v50 }
 0xf54   :  { %2812 = vtanh.f32 %v1307_v19 }
 0xf55   :  { %v1301_v20 = vpop.permute.xlu0 %1300 }
 0xf56   :  { %v1308_v21 = vadd.f32 %v1301_v20, %v1162_v53 }
 0xf58   :  { %2814 = vtanh.f32 %v1308_v21 }
 0xf59   :  { %v1303_v25 = vpop.permute.xlu1 %1302 }
 0xf5a   :  { %v1309_v26 = vadd.f32 %v1303_v25, %v1163_v31 }
 0xf5c   :  { %2816 = vtanh.f32 %v1309_v26 }
 0xf5e   :  { %v2813_v27 = vpop.eup %2812 }
 0xf5f   :  { %1319 = vrot.lane.b32.xlu0 %v2813_v27, %s2886_s28 }
 0xf62   :  { %v2815_v28 = vpop.eup %2814 }
 0xf63   :  { %1321 = vrot.lane.b32.xlu1 %v2815_v28, %s2886_s28 }
 0xf66   :  { %v2817_v61 = vpop.eup %2816 }
 0xf67   :  { %1323 = vrot.lane.b32.xlu0 %v2817_v61, %s2886_s28 }
 0xfd1   :  { %v1320_v14 = vpop.permute.xlu0 %1319 }
 0xfd2   :  { %v1328_v32 = vmul.f32 %v1320_v14, %v1313_v2 }
 0xfd4   :  { %v3349_v33 = vadd.f32 %v1331_v30, %v1328_v32 }
 0xfd5   :  { %v1322_v35 = vpop.permute.xlu1 %1321 }
 0xfd6   :  { %v1329_v12 = vmul.f32 %v1322_v35, %v1314_v34  ;;  %1344 = vrot.lane.b32.xlu1 %v3349_v33, %s2886_s28 }
 0xfd8   :  { %v3354_v38 = vadd.f32 %v1332_v37, %v1329_v12 }
 0xfd9   :  { %v1324_v39 = vpop.permute.xlu0 %1323 }
 0xfda   :  { %v1330_v9 = vmul.f32 %v1324_v39, %v1315_v13  ;;  %1346 = vrot.lane.b32.xlu0 %v3354_v38, %s2886_s28 }
 0xfdc   :  { %v3362_v17 = vadd.f32 %v1333_v40, %v1330_v9 }
 0xfde   :  { %162 = vperm.xlu0 %2708, %v63_v16   ;;  %1348 = vrot.lane.b32.xlu1 %v3362_v17, %s2886_s28 }
 0xfe2   :  { %172 = vperm.xlu0 %2708, %v65_v22   ;;  %167 = vperm.xlu1 %2709, %v64_v29  }
0x1048   :  { %v1345_v42 = vpop.permute.xlu1 %1344 }
0x1049   :  { %2517 = vmatmul.mubr.msk.f32.vlgmr.msra.gmra.mrb[18].mxu0 %vm290_vm2, %v1345_v42 }
0x104a   :  { %2519 = vmatprep.mubr.msk.f32.mxu0 %vm2882_vm0, %v2883_v6 }
0x104c   :  { %v1347_v43 = vpop.permute.xlu0 %1346 }
0x104d   :  { %2520 = vmatmul.mubr.msk.f32.gmra.mrb[20].mxu0 %vm290_vm2, %v1347_v43 }
0x104e   :  { %2522 = vmatprep.mubr.msk.f32.mxu0 %vm2882_vm0, %v2883_v6 }
0x1050   :  { %v1349_v44 = vpop.permute.xlu1 %1348 }
0x1051   :  { %2523 = vmatmul.mubr.msk.f32.gmra.mrb[22].mxu0 %vm290_vm2, %v1349_v44 }
0x1052   :  { %2550 = vmatprep.mubr.msk.f32.mxu0 %vm2882_vm0, %v2883_v6 }
0x105d   :  { %v163_v45 = vpop.permute.xlu0 %162 }
0x105e   :  { %v214_v47 = vmul.f32 %v3315_v4, %v163_v45 }
0x1060   :  { %v245_v48 = vadd.f32 %v3321_v10, %v214_v47 }
0x1061   :  { %v168_v49 = vpop.permute.xlu1 %167  ;;  %v173_v23 = vpop.permute.xlu0 %172 }
0x1062   :  { %270 = vst.msk [vmem:[#allocation2 + $0x90] sm:$0xff] %vm251_vm1, %v245_v48  ;;  %v215_v50 = vmul.f32 %v3315_v4, %v168_v49  ;;  %v216_v52 = vmul.f32 %v3315_v4, %v173_v23 }
0x1064   :  { %v246_v53 = vadd.f32 %v3321_v10, %v215_v50  ;;  %v247_v54 = vadd.f32 %v3321_v10, %v216_v52 }
0x1066   :  { %271 = vst.msk [vmem:[#allocation2 + $0x98] sm:$0xff] %vm251_vm1, %v246_v53  ;;  %272 = vst.msk [vmem:[#allocation2 + $0xa0] sm:$0xff] %vm251_vm1, %v247_v54 }
0x1069   :  { %v1338_v63 = vld [vmem:[#allocation2 + $0x90] sm:$0xff] }
0x106d   :  { %v1339_v1 = vld [vmem:[#allocation2 + $0x98] sm:$0xff]  ;;  %v1340_v8 = vld [vmem:[#allocation2 + $0xa0] sm:$0xff] }
0x111c   :  { %v1422_v55 = vpop.f32.mrb[18].mxu0 }
0x111d   :  { %v1423_v31 = vadd.f32 %v3334_v24, %v1422_v55  ;;  %v2518_v36 = vpop.f32.mrb[19].mxu0 }
0x111f   :  { %1460 = vrot.lane.b32.xlu1 %v1423_v31, %s2885_s27  ;;  %v1436_v0 = vadd.f32 %v1423_v31, %v1338_v63 }
0x1120   :  { %v1427_v41 = vpop.f32.mrb[20].mxu0 }
0x1121   :  { %v1428_v57 = vadd.f32 %v3334_v24, %v1427_v41  ;;  %v2521_v58 = vpop.f32.mrb[21].mxu0  ;;  %v2289_v5 = vmul.f32 -1.442695, %v1436_v0 }
0x1123   :  { %1462 = vrot.lane.b32.xlu0 %v1428_v57, %s2885_s27  ;;  %v1437_v7 = vadd.f32 %v1428_v57, %v1339_v1  ;;  %2818 = vpow2.f32 %v2289_v5 }
0x1124   :  { %v1432_v59 = vpop.f32.mrb[22].mxu0 }
0x1125   :  { %v1433_v60 = vadd.f32 %v3334_v24, %v1432_v59  ;;  %v2524_v62 = vpop.f32.mrb[23].mxu0  ;;  %v2290_v11 = vmul.f32 -1.442695, %v1437_v7 }
0x1127   :  { %1464 = vrot.lane.b32.xlu1 %v1433_v60, %s2885_s27  ;;  %v1438_v46 = vadd.f32 %v1433_v60, %v1340_v8  ;;  %2820 = vpow2.f32 %v2290_v11 }
0x1129   :  { %v2291_v51 = vmul.f32 -1.442695, %v1438_v46 }
0x112b   :  { %2822 = vpow2.f32 %v2291_v51 }
0x112d   :  { %v2819_v56 = vpop.eup %2818 }
0x112e   :  { %v1448_v15 = vadd.f32 1.0, %v2819_v56 }
0x1130   :  { %2824 = vrcp.f32 %v1448_v15 }
0x1131   :  { %v2821_v18 = vpop.eup %2820 }
0x1132   :  { %v1449_v19 = vadd.f32 1.0, %v2821_v18 }
0x1134   :  { %2826 = vrcp.f32 %v1449_v19 }
0x1135   :  { %v2823_v20 = vpop.eup %2822 }
0x1136   :  { %v1450_v21 = vadd.f32 1.0, %v2823_v20 }
0x1138   :  { %2828 = vrcp.f32 %v1450_v21 }
0x113a   :  { %v2825_v25 = vpop.eup %2824 }
0x113b   :  { %v1490_v22 = vsub.f32 1.0, %v2825_v25  ;;  %v1508_v42 = vmul.f32 %v2825_v25, %v3349_v33  ;;  %v66_v33 = vld [vmem:[%s3579_s0 + $0xa8] sm:$0xff] }
0x113e   :  { %v2827_v28 = vpop.eup %2826 }
0x113f   :  { %v1491_v45 = vsub.f32 1.0, %v2827_v28  ;;  %v1509_v48 = vmul.f32 %v2827_v28, %v3354_v38  ;;  %v67_v38 = vld [vmem:[%s3579_s0 + $0xb0] sm:$0xff] }
0x1142   :  { %v2829_v14 = vpop.eup %2828 }
0x1143   :  { %v1492_v50 = vsub.f32 1.0, %v2829_v14  ;;  %v1510_v53 = vmul.f32 %v2829_v14, %v3362_v17  ;;  %v68_v17 = vld [vmem:[%s3579_s0 + $0xb8] sm:$0xff] }
0x1191   :  { %v1461_v26 = vpop.permute.xlu1 %1460 }
0x1192   :  { %v1469_v27 = vmul.f32 %v2825_v25, %v1461_v26 }
0x1194   :  { %1475 = vrot.lane.b32.xlu0 %v1469_v27, %s2885_s27 }
0x1195   :  { %v1463_v61 = vpop.permute.xlu0 %1462 }
0x1196   :  { %v1470_v2 = vmul.f32 %v2827_v28, %v1463_v61 }
0x1198   :  { %1477 = vrot.lane.b32.xlu1 %v1470_v2, %s2885_s27 }
0x1199   :  { %v1465_v30 = vpop.permute.xlu1 %1464 }
0x119a   :  { %v1471_v32 = vmul.f32 %v2829_v14, %v1465_v30 }
0x119c   :  { %1479 = vrot.lane.b32.xlu0 %v1471_v32, %s2885_s27 }
0x1206   :  { %v1476_v34 = vpop.permute.xlu0 %1475 }
0x1207   :  { %v1484_v35 = vadd.f32 %v1476_v34, %v1338_v63 }
0x1209   :  { %2830 = vtanh.f32 %v1484_v35 }
0x120a   :  { %v1478_v37 = vpop.permute.xlu1 %1477 }
0x120b   :  { %v1485_v12 = vadd.f32 %v1478_v37, %v1339_v1 }
0x120d   :  { %2832 = vtanh.f32 %v1485_v12 }
0x120e   :  { %v1480_v13 = vpop.permute.xlu0 %1479 }
0x120f   :  { %v1486_v39 = vadd.f32 %v1480_v13, %v1340_v8 }
0x1211   :  { %2834 = vtanh.f32 %v1486_v39 }
0x1213   :  { %v2831_v40 = vpop.eup %2830 }
0x1214   :  { %1496 = vrot.lane.b32.xlu1 %v2831_v40, %s2886_s28 }
0x1217   :  { %v2833_v9 = vpop.eup %2832 }
0x1218   :  { %1498 = vrot.lane.b32.xlu0 %v2833_v9, %s2886_s28 }
0x121b   :  { %v2835_v16 = vpop.eup %2834 }
0x121c   :  { %1500 = vrot.lane.b32.xlu1 %v2835_v16, %s2886_s28 }
0x1286   :  { %v1497_v29 = vpop.permute.xlu1 %1496 }
0x1287   :  { %v1505_v43 = vmul.f32 %v1497_v29, %v1490_v22 }
0x1289   :  { %v3403_v44 = vadd.f32 %v1508_v42, %v1505_v43 }
0x128a   :  { %v1499_v47 = vpop.permute.xlu0 %1498 }
0x128b   :  { %v1506_v49 = vmul.f32 %v1499_v47, %v1491_v45  ;;  %1521 = vrot.lane.b32.xlu0 %v3403_v44, %s2886_s28 }
0x128d   :  { %v3408_v23 = vadd.f32 %v1509_v48, %v1506_v49 }
0x128e   :  { %v1501_v52 = vpop.permute.xlu1 %1500 }
0x128f   :  { %v1507_v54 = vmul.f32 %v1501_v52, %v1492_v50  ;;  %1523 = vrot.lane.b32.xlu1 %v3408_v23, %s2886_s28  ;;  %v1694_v50 = vld [vmem:[%s3585_s6] sm:$0xff]  ;;  %v1695_v52 = vld [vmem:[%s3585_s6 + $0x8] sm:$0xff] }
0x1291   :  { %v3416_v55 = vadd.f32 %v1510_v53, %v1507_v54  ;;  %v1696_v53 = vld [vmem:[%s3585_s6 + $0x10] sm:$0xff]  ;;  %v2675_v54 = vpack.c.bf16 %v1695_v52, %v1694_v50  ;;  %v2150_v50 = vld [vmem:[%s3590_s11] sm:$0xff]  ;;  %v2151_v52 = vld [vmem:[%s3590_s11 + $0x8] sm:$0xff] }
0x1293   :  { %1525 = vrot.lane.b32.xlu0 %v3416_v55, %s2886_s28  ;;  %177 = vperm.xlu1 %2709, %v66_v33   ;;  %v1697_v33 = vld [vmem:[%s3585_s6 + $0x18] sm:$0xff] }
0x1294   :  { %2676 = vmatpush3.bf16.msra.mxu0 %v2675_v54  ;;  %v2696_v54 = vpack.c.bf16 %v2151_v52, %v2150_v50 }
0x1295   :  { %2677 = vmatprep.subr.bf16.mxu0 %v2881_v3 }
0x1297   :  { %182 = vperm.xlu0 %2708, %v67_v38   ;;  %187 = vperm.xlu1 %2709, %v68_v17   ;;  %v2678_v38 = vpack.c.bf16 %v1697_v33, %v1696_v53  ;;  %v2152_v53 = vld [vmem:[%s3590_s11 + $0x10] sm:$0xff]  ;;  %v2153_v33 = vld [vmem:[%s3590_s11 + $0x18] sm:$0xff] }
0x1299   :  { %2679 = vmatpush3.bf16.msra.mxu0 %v2678_v38  ;;  %v2699_v38 = vpack.c.bf16 %v2153_v33, %v2152_v53 }
0x129a   :  { %2683 = vmatprep.subr.bf16.mxu0 %v2881_v3 }
0x12fd   :  { %v1522_v31 = vpop.permute.xlu0 %1521 }
0x12fe   :  { %2534 = vmatmul.mubr.msk.f32.vlgmr.msra.gmra.mrb[18].mxu1 %vm290_vm2, %v1522_v31 }
0x12ff   :  { %2536 = vmatprep.mubr.msk.f32.mxu1 %vm2882_vm0, %v2883_v6 }
0x1301   :  { %v1524_v36 = vpop.permute.xlu1 %1523 }
0x1302   :  { %2537 = vmatmul.mubr.msk.f32.gmra.mrb[20].mxu1 %vm290_vm2, %v1524_v36 }
0x1303   :  { %2539 = vmatprep.mubr.msk.f32.mxu1 %vm2882_vm0, %v2883_v6 }
0x1305   :  { %v1526_v41 = vpop.permute.xlu0 %1525 }
0x1306   :  { %2540 = vmatmul.mubr.msk.f32.gmra.mrb[22].mxu1 %vm290_vm2, %v1526_v41 }
0x1307   :  { %2565 = vmatprep.mubr.msk.f32.mxu1 %vm2882_vm0, %v2883_v6 }
0x1312   :  { %v178_v57 = vpop.permute.xlu1 %177 }
0x1313   :  { %v217_v58 = vmul.f32 %v3315_v4, %v178_v57 }
0x1315   :  { %v248_v59 = vadd.f32 %v3321_v10, %v217_v58 }
0x1316   :  { %v188_v60 = vpop.permute.xlu1 %187  ;;  %v183_v62 = vpop.permute.xlu0 %182 }
0x1317   :  { %273 = vst.msk [vmem:[#allocation2 + $0xa8] sm:$0xff] %vm251_vm1, %v248_v59  ;;  %v219_v63 = vmul.f32 %v3315_v4, %v188_v60  ;;  %v218_v0 = vmul.f32 %v3315_v4, %v183_v62 }
0x1319   :  { %v250_v1 = vadd.f32 %v3321_v10, %v219_v63  ;;  %v249_v5 = vadd.f32 %v3321_v10, %v218_v0 }
0x131b   :  { %275 = vst.msk [vmem:[#allocation2 + $0xb8] sm:$0xff] %vm251_vm1, %v250_v1  ;;  %274 = vst.msk [vmem:[#allocation2 + $0xb0] sm:$0xff] %vm251_vm1, %v249_v5 }
0x131e   :  { %v1515_v18 = vld [vmem:[#allocation2 + $0xa8] sm:$0xff] }
0x1322   :  { %v1516_v20 = vld [vmem:[#allocation2 + $0xb0] sm:$0xff]  ;;  %v1517_v26 = vld [vmem:[#allocation2 + $0xb8] sm:$0xff] }
0x13d1   :  { %v1599_v7 = vpop.f32.mrb[18].mxu1 }
0x13d2   :  { %v1600_v8 = vadd.f32 %v3334_v24, %v1599_v7  ;;  %v2535_v11 = vpop.f32.mrb[19].mxu1 }
0x13d4   :  { %1637 = vrot.lane.b32.xlu0 %v1600_v8, %s2885_s27  ;;  %v1613_v19 = vadd.f32 %v1600_v8, %v1515_v18 }
0x13d5   :  { %v1604_v46 = vpop.f32.mrb[20].mxu1 }
0x13d6   :  { %v1605_v51 = vadd.f32 %v3334_v24, %v1604_v46  ;;  %v2538_v56 = vpop.f32.mrb[21].mxu1  ;;  %v2295_v21 = vmul.f32 -1.442695, %v1613_v19 }
0x13d7   :  { %v1894_v56 = vld [vmem:[%s3587_s8 + $0x8] sm:$0xff] }
0x13d8   :  { %1639 = vrot.lane.b32.xlu1 %v1605_v51, %s2885_s27  ;;  %v1614_v25 = vadd.f32 %v1605_v51, %v1516_v20  ;;  %2836 = vpow2.f32 %v2295_v21 }
0x13d9   :  { %v1609_v4 = vpop.f32.mrb[22].mxu1 }
0x13da   :  { %v1610_v15 = vadd.f32 %v3334_v24, %v1609_v4  ;;  %v2541_v10 = vpop.f32.mrb[23].mxu1  ;;  %v2296_v27 = vmul.f32 -1.442695, %v1614_v25 }
0x13dc   :  { %1641 = vrot.lane.b32.xlu0 %v1610_v15, %s2885_s27  ;;  %v1615_v28 = vadd.f32 %v1610_v15, %v1517_v26  ;;  %2838 = vpow2.f32 %v2296_v27  ;;  %v1692_v27 = vld [vmem:[%s3584_s5 + $0x8] sm:$0xff] }
0x13de   :  { %v2297_v61 = vmul.f32 -1.442695, %v1615_v28  ;;  %v1693_v28 = vld [vmem:[%s3584_s5 + $0x10] sm:$0xff] }
0x13e0   :  { %2840 = vpow2.f32 %v2297_v61  ;;  %v1895_v61 = vld [vmem:[%s3587_s8 + $0x10] sm:$0xff] }
0x13e2   :  { %v2837_v2 = vpop.eup %2836 }
0x13e3   :  { %v1625_v14 = vadd.f32 1.0, %v2837_v2  ;;  %v1896_v2 = vld [vmem:[%s3587_s8 + $0x18] sm:$0xff] }
0x13e5   :  { %2842 = vrcp.f32 %v1625_v14  ;;  %v2687_v14 = vpack.c.bf16 %v1896_v2, %v1895_v61 }
0x13e6   :  { %v2839_v30 = vpop.eup %2838 }
0x13e7   :  { %v1626_v24 = vadd.f32 1.0, %v2839_v30  ;;  %v2301_v30 = vld [vmem:[%s3586_s7] ss:$0 sm:$0xff] }
0x13e9   :  { %2844 = vrcp.f32 %v1626_v24 }
0x13ea   :  { %v2841_v32 = vpop.eup %2840 }
0x13eb   :  { %v1627_v34 = vadd.f32 1.0, %v2841_v32 }
0x13ed   :  { %2846 = vrcp.f32 %v1627_v34 }
0x13ef   :  { %v2843_v35 = vpop.eup %2842 }
0x13f0   :  { %v1667_v36 = vsub.f32 1.0, %v2843_v35  ;;  %v1685_v57 = vmul.f32 %v2843_v35, %v3403_v44 }
0x13f3   :  { %v2845_v13 = vpop.eup %2844 }
0x13f4   :  { %v1668_v60 = vsub.f32 1.0, %v2845_v13  ;;  %v1686_v63 = vmul.f32 %v2845_v13, %v3408_v23 }
0x13f7   :  { %v2847_v9 = vpop.eup %2846 }
0x13f8   :  { %v1669_v5 = vsub.f32 1.0, %v2847_v9  ;;  %v1687_v8 = vmul.f32 %v2847_v9, %v3416_v55  ;;  %v1893_v55 = vld [vmem:[%s3587_s8] sm:$0xff] }
0x13f9   :  { %v2684_v4 = vpack.c.bf16 %v1894_v56, %v1893_v55 }
0x1446   :  { %v1638_v37 = vpop.permute.xlu0 %1637 }
0x1447   :  { %v1646_v12 = vmul.f32 %v2843_v35, %v1638_v37 }
0x1449   :  { %1652 = vrot.lane.b32.xlu1 %v1646_v12, %s2885_s27 }
0x144a   :  { %v1640_v39 = vpop.permute.xlu1 %1639 }
0x144b   :  { %v1647_v40 = vmul.f32 %v2845_v13, %v1640_v39 }
0x144d   :  { %1654 = vrot.lane.b32.xlu0 %v1647_v40, %s2885_s27 }
0x144e   :  { %v1642_v16 = vpop.permute.xlu0 %1641 }
0x144f   :  { %v1648_v22 = vmul.f32 %v2847_v9, %v1642_v16 }
0x1451   :  { %1656 = vrot.lane.b32.xlu1 %v1648_v22, %s2885_s27 }
0x14bb   :  { %v1653_v29 = vpop.permute.xlu1 %1652 }
0x14bc   :  { %v1661_v42 = vadd.f32 %v1653_v29, %v1515_v18 }
0x14be   :  { %2848 = vtanh.f32 %v1661_v42 }
0x14bf   :  { %v1655_v43 = vpop.permute.xlu0 %1654 }
0x14c0   :  { %v1662_v45 = vadd.f32 %v1655_v43, %v1516_v20 }
0x14c2   :  { %2850 = vtanh.f32 %v1662_v45 }
0x14c3   :  { %v1657_v47 = vpop.permute.xlu1 %1656 }
0x14c4   :  { %v1663_v48 = vadd.f32 %v1657_v47, %v1517_v26  ;;  %v1691_v26 = vld [vmem:[%s3584_s5] sm:$0xff] }
0x14c6   :  { %2852 = vtanh.f32 %v1663_v48 }
0x14c8   :  { %v2849_v49 = vpop.eup %2848 }
0x14c9   :  { %1673 = vrot.lane.b32.xlu0 %v2849_v49, %s2886_s28 }
0x14cc   :  { %v2851_v17 = vpop.eup %2850 }
0x14cd   :  { %1675 = vrot.lane.b32.xlu1 %v2851_v17, %s2886_s28  ;;  %v2308_v17 = vld [vmem:[%s3588_s9] ss:$0 sm:$0xff] }
0x14d0   :  { %v2853_v31 = vpop.eup %2852 }
0x14d1   :  { %1677 = vrot.lane.b32.xlu0 %v2853_v31, %s2886_s28 }
0x153b   :  { %v1674_v41 = vpop.permute.xlu0 %1673 }
0x153c   :  { %v1682_v58 = vmul.f32 %v1674_v41, %v1667_v36 }
0x153e   :  { %v1688_v59 = vadd.f32 %v1685_v57, %v1682_v58 }
0x153f   :  { %v1676_v62 = vpop.permute.xlu1 %1675 }
0x1540   :  { %v1683_v0 = vmul.f32 %v1676_v62, %v1668_v60  ;;  %1701 = vrot.lane.b32.xlu1 %v1688_v59, %s2886_s28 }
0x1542   :  { %v1689_v1 = vadd.f32 %v1686_v63, %v1683_v0 }
0x1543   :  { %v1678_v7 = vpop.permute.xlu0 %1677 }
0x1544   :  { %v1684_v11 = vmul.f32 %v1678_v7, %v1669_v5  ;;  %1703 = vrot.lane.b32.xlu0 %v1689_v1, %s2886_s28 }
0x1546   :  { %v1690_v46 = vadd.f32 %v1687_v8, %v1684_v11 }
0x1548   :  { %1705 = vrot.lane.b32.xlu1 %v1690_v46, %s2886_s28  ;;  %v2313_v46 = vld [vmem:[%s3591_s12] ss:$0 sm:$0xff] }
0x15b2   :  { %v1702_v44 = vpop.permute.xlu1 %1701 }
0x15b3   :  { %2551 = vmatmul.mubr.msk.f32.vlgmr.msra.gmra.mrb[24].mxu0 %vm290_vm2, %v1702_v44 }
0x15b4   :  { %2553 = vmatprep.mubr.msk.f32.mxu0 %vm2882_vm0, %v2883_v6  ;;  %2685 = vmatpush3.bf16.msra.mxu0 %v2684_v4 }
0x15b5   :  { %2686 = vmatprep.subr.bf16.mxu0 %v2881_v3 }
0x15b6   :  { %v1704_v23 = vpop.permute.xlu0 %1703 }
0x15b7   :  { %2554 = vmatmul.mubr.msk.f32.gmra.mrb[26].mxu0 %vm290_vm2, %v1704_v23 }
0x15b8   :  { %2556 = vmatprep.mubr.msk.f32.mxu0 %vm2882_vm0, %v2883_v6  ;;  %2688 = vmatpush3.bf16.msra.mxu0 %v2687_v14 }
0x15b9   :  { %2692 = vmatprep.subr.bf16.mxu0 %v2881_v3 }
0x15ba   :  { %v1706_v51 = vpop.permute.xlu1 %1705 }
0x15bb   :  { %2557 = vmatmul.mubr.msk.f32.gmra.mrb[28].mxu0 %vm290_vm2, %v1706_v51 }
0x15bc   :  { %2582 = vmatprep.mubr.msk.f32.mxu0 %vm2882_vm0, %v2883_v6 }
0x1686   :  { %v1779_v15 = vpop.f32.mrb[24].mxu0 }
0x1687   :  { %v2552_v10 = vpop.f32.mrb[25].mxu0 }
0x168a   :  { %v1784_v18 = vpop.f32.mrb[26].mxu0 }
0x168b   :  { %v2681_v19 = vpack.c.bf16 %v1784_v18, %v1779_v15  ;;  %v2555_v20 = vpop.f32.mrb[27].mxu0 }
0x168d   :  { %2682 = vmatpush3.bf16.msra.mxu1 %v2681_v19 }
0x168e   :  { %v1789_v21 = vpop.f32.mrb[28].mxu0  ;;  %2563 = vmatprep.subr.mxu1 %v2883_v6 }
0x168f   :  { %v2558_v25 = vpop.f32.mrb[29].mxu0 }
0x1691   :  { %2564 = vmatpush3.msra.mxu1 %v1789_v21 }
0x1692   :  { %2566 = vmatmul.mubr.msk.f32.vlgmr.msra.gmra.mrb[24].mxu1 %vm1800_vm3, %v1691_v26  ;;  %2689 = vmatprep.subr.bf16.mxu1 %v2881_v3 }
0x1693   :  { %2568 = vmatprep.mubr.msk.f32.mxu1 %vm2882_vm0, %v2883_v6 }
0x1696   :  { %2569 = vmatmul.mubr.msk.f32.gmra.mrb[26].mxu1 %vm1800_vm3, %v1692_v27 }
0x1697   :  { %2571 = vmatprep.mubr.msk.f32.mxu1 %vm2882_vm0, %v2883_v6 }
0x169a   :  { %2572 = vmatmul.mubr.msk.f32.gmra.mrb[28].mxu1 %vm1800_vm3, %v1693_v28 }
0x169b   :  { %2597 = vmatprep.mubr.msk.f32.mxu1 %vm2882_vm0, %v2883_v6 }
0x1765   :  { %v1876_v24 = vpop.f32.mrb[24].mxu1 }
0x1766   :  { %v1877_v32 = vadd.f32 %v2301_v30, %v1876_v24  ;;  %v2567_v34 = vpop.f32.mrb[25].mxu1 }
0x1768   :  { %v1890_v35 = vmax.f32 %v1877_v32, 0.0 }
0x1769   :  { %v1881_v37 = vpop.f32.mrb[26].mxu1 }
0x176a   :  { %v1882_v12 = vadd.f32 %v2301_v30, %v1881_v37  ;;  %v2570_v13 = vpop.f32.mrb[27].mxu1  ;;  %2583 = vmatmul.mubr.msk.f32.vlgmr.msra.gmra.mrb[30].mxu0 %vm290_vm2, %v1890_v35 }
0x176b   :  { %2585 = vmatprep.mubr.msk.f32.mxu0 %vm2882_vm0, %v2883_v6 }
0x176c   :  { %v1891_v39 = vmax.f32 %v1882_v12, 0.0 }
0x176d   :  { %v1886_v40 = vpop.f32.mrb[28].mxu1 }
0x176e   :  { %v1887_v9 = vadd.f32 %v2301_v30, %v1886_v40  ;;  %2586 = vmatmul.mubr.msk.f32.gmra.mrb[32].mxu0 %vm290_vm2, %v1891_v39  ;;  %v2573_v16 = vpop.f32.mrb[29].mxu1 }
0x176f   :  { %2588 = vmatprep.mubr.msk.f32.mxu0 %vm2882_vm0, %v2883_v6 }
0x1770   :  { %v1892_v22 = vmax.f32 %v1887_v9, 0.0 }
0x1772   :  { %2589 = vmatmul.mubr.msk.f32.gmra.mrb[34].mxu0 %vm290_vm2, %v1892_v22 }
0x1773   :  { %2612 = vmatprep.mubr.msk.f32.mxu0 %vm2882_vm0, %v2883_v6 }
0x183d   :  { %v1972_v29 = vpop.f32.mrb[30].mxu0 }
0x183e   :  { %v2584_v42 = vpop.f32.mrb[31].mxu0 }
0x1841   :  { %v1977_v43 = vpop.f32.mrb[32].mxu0 }
0x1842   :  { %v2690_v45 = vpack.c.bf16 %v1977_v43, %v1972_v29  ;;  %v2587_v47 = vpop.f32.mrb[33].mxu0 }
0x1844   :  { %2691 = vmatpush3.bf16.msra.mxu1 %v2690_v45 }
0x1845   :  { %v1982_v48 = vpop.f32.mrb[34].mxu0  ;;  %2595 = vmatprep.subr.mxu1 %v2883_v6 }
0x1846   :  { %v2590_v49 = vpop.f32.mrb[35].mxu0 }
0x1848   :  { %2596 = vmatpush3.msra.mxu1 %v1982_v48 }
0x1849   :  { %2598 = vmatmul.mubr.msk.f32.vlgmr.msra.gmra.mrb[30].mxu1 %vm1800_vm3, %v1691_v26  ;;  %2695 = vmatprep.subr.bf16.mxu1 %v2881_v3 }
0x184a   :  { %2600 = vmatprep.mubr.msk.f32.mxu1 %vm2882_vm0, %v2883_v6  ;;  %2697 = vmatpush3.bf16.msra.mxu1 %v2696_v54 }
0x184b   :  { %2698 = vmatprep.subr.bf16.mxu1 %v2881_v3  ;;  %v2076_v3 = vld [vmem:[%s3589_s10] sm:$0x3]  ;;  %s2857_s10 = scalar_lea.vmem %s2243_s4, 32 }
0x184c   :  { %p2858_p0 = scmp.ne.s32.totalorder %s2243_s4, %s2857_s10  ;;  %p2863_p2 = scmp.lt.s32.totalorder %s2857_s10, %s2857_s10 }
0x184d   :  { %2601 = vmatmul.mubr.msk.f32.gmra.mrb[32].mxu1 %vm1800_vm3, %v1692_v27 }
0x184e   :  { %2603 = vmatprep.mubr.msk.f32.mxu1 %vm2882_vm0, %v2883_v6  ;;  %2700 = vmatpush3.bf16.msra.mxu1 %v2699_v38  ;;  %p2864_p3 = por %p2863_p2, %p2862_p1 }
0x1850   :  { %p2865_p4 = pnand %p2864_p3, %p2858_p0 }
0x1851   :  { %2604 = vmatmul.mubr.msk.f32.gmra.mrb[34].mxu1 %vm1800_vm3, %v1693_v28 }
0x1852   :  { %2623 = vmatprep.mubr.msk.f32.mxu1 %vm2882_vm0, %v2883_v6 }
0x191c   :  { %v2059_v31 = vpop.f32.mrb[30].mxu1 }
0x191d   :  { %v2599_v36 = vpop.f32.mrb[31].mxu1  ;;  %v2060_v41 = vadd.f32 %v2308_v17, %v2059_v31 }
0x191f   :  { %v2073_v60 = vmax.f32 %v2060_v41, 0.0 }
0x1920   :  { %v2064_v57 = vpop.f32.mrb[32].mxu1 }
0x1921   :  { %v2065_v58 = vadd.f32 %v2308_v17, %v2064_v57  ;;  %v2602_v59 = vpop.f32.mrb[33].mxu1 }
0x1923   :  { %v2074_v62 = vmax.f32 %v2065_v58, 0.0 }
0x1924   :  { %v2069_v63 = vpop.f32.mrb[34].mxu1 }
0x1925   :  { %v2693_v0 = vpack.c.bf16 %v2074_v62, %v2073_v60  ;;  %v2070_v1 = vadd.f32 %v2308_v17, %v2069_v63  ;;  %v2605_v5 = vpop.f32.mrb[35].mxu1 }
0x1927   :  { %v2075_v7 = vmax.f32 %v2070_v1, 0.0  ;;  %2694 = vmatpush3.bf16.msra.mxu0 %v2693_v0 }
0x1928   :  { %2610 = vmatprep.subr.mxu0 %v2883_v6 }
0x192b   :  { %2611 = vmatpush3.msra.mxu0 %v2075_v7 }
0x192c   :  { %2613 = vmatmul.mubr.msk.f32.vlgmr.msra.gmra.mrb[36].mxu0 %vm1800_vm3, %v2076_v3 }
0x19ff   :  { %v2146_v8 = vpop.f32.mrb[36].mxu0 }
0x1a00   :  { %v2614_v11 = vpop.f32.mrb[37].mxu0  ;;  %2624 = vmatmul.mubr.msk.f32.vlgmr.msra.gmra.mrb[36].mxu1 %vm290_vm2, %v2146_v8 }
0x1ad3   :  { %v2230_v44 = vpop.f32.mrb[36].mxu1 }
0x1ad4   :  { %v2231_v6 = vadd.f32 %v2313_v46, %v2230_v44  ;;  %v2625_v23 = vpop.f32.mrb[37].mxu1 }
0x1ad6   :  { %2235 = vst.msk [vmem:[#allocation3] sm:$0x3] %vm2234_vm4, %v2231_v6 }
0x1ad7   :  { %2868 = shalt.err (!%p2865_p4)
}
0x1ad8   :  { %s2869_s16 = scalar_lea.hbm %s3592_s13, 32 }
0x1ad9   :  { %p2870_p5 = scmp.ne.s32.totalorder %s3592_s13, %s2869_s16  ;;  %p2873_p6 = scmp.lt.u32.totalorder %s2869_s16, %s3592_s13 }
0x1adb   :  { %p2875_p7 = pnand %p2873_p6, %p2870_p5 }
0x1add   :  { %2878 = shalt.err (!%p2875_p7)
}
0x1ade   :  { %2245 = dma.vmem_to_hbm [thread:$0]  %s2243_s4, 32, %s3592_s13, [#allocation4]  }
0x1adf   :  { %2879 = dma.done.wait [#allocation4], 32  }
0x1ae0   :  { %2880 = vsyncadd [#allocation4], 4294967264 }
0x1ae1   :  { %2249 = vsyncpa [#allocation4], 1 }

</bundles_post_ra>
